<compile_context>
chip_gen: v7x
topology: tpu7x:2x2x1
jax: 0.10.0
libtpu: 0.0.40
codegen_flags: <defaults>
</compile_context>

<pallas_src>
import jax
import jax.numpy as jnp
from jax.experimental import pallas as pl
from jax.experimental.pallas import tpu as pltpu

BN_EPS = 1e-5  # nn.BatchNorm1d default eps


# ---------------------------------------------------------------------------
# Kernel
# ---------------------------------------------------------------------------
def _mlp_kernel(x_ref,
                w1_ref, b1_ref, w2_ref, b2_ref, w3_ref, b3_ref,
                w4_ref, b4_ref, w5_ref, b5_ref,
                o_ref):
    cdt = w1_ref.dtype  # MXU compute dtype (bf16 or f32); accumulation is f32

    def hidden_layer(h, w_ref, b_ref):
        # matmul (MXU, f32 accum) -> bias add + ReLU in f32 (VPU, v5e-safe)
        # -> cast back to compute dtype for the next matmul (epilogue-fused).
        y = jnp.dot(h, w_ref[...], preferred_element_type=jnp.float32) + b_ref[...]
        return jnp.maximum(y, 0.0).astype(cdt)

    h = x_ref[...]                       # already in compute dtype (wrapper cast)
    h = hidden_layer(h, w1_ref, b1_ref)
    h = hidden_layer(h, w2_ref, b2_ref)
    h = hidden_layer(h, w3_ref, b3_ref)
    h = hidden_layer(h, w4_ref, b4_ref)
    # final layer: no ReLU, f32 output, lane-dense (t_pad multiple of 128)
    o_ref[...] = jnp.dot(h, w5_ref[...],
                         preferred_element_type=jnp.float32) + b5_ref[...]


# ---------------------------------------------------------------------------
# One-time parameter preparation (weight_norm + BN folding + lane padding)
# ---------------------------------------------------------------------------
def _fold_bn(gamma, beta, running_mean, running_var):
    """BatchNorm1d (eval) -> per-feature scale/shift, shaped (F,)."""
    scale = gamma / jnp.sqrt(running_var + BN_EPS)
    shift = beta - running_mean * scale
    return scale, shift


def _weight_norm(v, g):
    """nn.utils.weight_norm (dim=0): w[o, :] = g[o] * v[o, :] / ||v[o, :]||.

    Matches PyTorch semantics (no eps): an all-zero row in v yields inf/NaN.
    """
    norm = jnp.sqrt(jnp.sum(v * v, axis=1, keepdims=True))
    return (g[:, None] / norm) * v


def _round_up(n, m):
    return ((n + m - 1) // m) * m


def prepare_params(params, *, compute_dtype=jnp.bfloat16):
    """Fold BN + weight_norm into 5 effective (W, b) pairs. Call ONCE.

    W_i is stored (in, out) so the kernel hot path is `x @ W`. BN before each
    dense is folded as  W_i' = diag(s_i) @ W_i ,  b_i' = b_i + t_i @ W_i .
    w1's input dim and w5's output dim are zero-padded to multiples of 128
    lanes (full-lane loads / unmasked stores).
    """
    prep = {}
    for i in range(1, 6):
        s, t = _fold_bn(params[f"bn{i}_gamma"], params[f"bn{i}_beta"],
                        params[f"bn{i}_mean"], params[f"bn{i}_var"])
        wt = _weight_norm(params[f"d{i}_v"], params[f"d{i}_g"]).T  # (in, out)
        w_eff = s[:, None] * wt
        b_eff = params[f"d{i}_b"] + t @ wt
        prep[f"w{i}"] = w_eff
        prep[f"b{i}"] = b_eff

    n_features = int(prep["w1"].shape[0])
    f_pad = _round_up(n_features, 128)
    if f_pad != n_features:
        prep["w1"] = jnp.pad(prep["w1"], ((0, f_pad - n_features), (0, 0)))

    n_targets = int(prep["w5"].shape[1])
    t_pad = _round_up(n_targets, 128)
    if t_pad != n_targets:
        prep["w5"] = jnp.pad(prep["w5"], ((0, 0), (0, t_pad - n_targets)))
        prep["b5"] = jnp.pad(prep["b5"], ((0, t_pad - n_targets),))

    out = {"n_features": n_features, "n_features_padded": f_pad,
           "n_targets": n_targets, "n_targets_padded": t_pad}
    for i in range(1, 6):
        out[f"w{i}"] = prep[f"w{i}"].astype(compute_dtype)          # MXU inputs
        out[f"b{i}"] = prep[f"b{i}"][None, :].astype(jnp.float32)   # f32 biases
    return out


# ---------------------------------------------------------------------------
# Tiling / VMEM helpers
# ---------------------------------------------------------------------------
def _pick_tb(batch):
    if batch < 128:
        return batch  # tiny batch: single grid step (latency path)
    # >=2 grid steps so ("parallel",) can shard across v7x's 2 TensorCores;
    # 512-row cap amortizes per-step overhead toward the HBM roofline.
    return min(512, _round_up((batch + 1) // 2, 8))


def _vmem_limit_bytes(need_bytes):
    """Scoped-VMEM cap: 2x estimated need + headroom, bounded by physical."""
    want = 2 * int(need_bytes) + (8 << 20)
    try:
        phys = int(pltpu.get_tpu_info().vmem_capacity_bytes)
    except Exception:  # pragma: no cover - conservative fallback
        phys = 64 << 20  # v7x: smallest physical VMEM per TensorCore
    return int(min(max(want, 32 << 20), (phys * 9) // 10))


# ---------------------------------------------------------------------------
# Forward wrapper
# ---------------------------------------------------------------------------
def modeldeep_forward(x, prep, *, tb=None, return_padded=False):
    """x: (B, n_features) float32.

    Returns (B, n_targets) float32, or the (B_pad, t_pad) padded block if
    return_padded=True (lets the consumer slice and skips one HBM pass).
    """
    B, F = x.shape
    assert F == prep["n_features"], "feature dim mismatch vs prepared params"
    f_pad = prep["n_features_padded"]
    t_pad = prep["n_targets_padded"]
    n_targets = prep["n_targets"]
    cdt = prep["w1"].dtype

    if tb is None:
        tb = _pick_tb(B)
    b_pad = _round_up(B, tb)

    # Single wrapper pass: zero-pad batch/features and cast to the MXU compute
    # dtype (halves the per-step x DMA in the bf16 path).
    x_in = x
    if b_pad != B or f_pad != F:
        x_in = jnp.pad(x_in, ((0, b_pad - B), (0, f_pad - F)))
    x_in = x_in.astype(cdt)

    operands = (x_in,
                prep["w1"], prep["b1"], prep["w2"], prep["b2"],
                prep["w3"], prep["b3"], prep["w4"], prep["b4"],
                prep["w5"], prep["b5"])

    resident = sum(int(op.size) * op.dtype.itemsize for op in operands[1:])
    tiles = 2 * tb * (f_pad * x_in.dtype.itemsize + t_pad * 4)  # double-buffered x/out
    vmem_limit = _vmem_limit_bytes(resident + tiles)

    def build_and_call(single_buffer_weights):
        def w_spec(op):
            # Constant index_map -> block is DMA'd once and stays resident.
            if single_buffer_weights:
                return pl.BlockSpec(op.shape, lambda i: (0, 0),
                                    pipeline_mode=pl.Buffered(1))
            return pl.BlockSpec(op.shape, lambda i: (0, 0))

        in_specs = [pl.BlockSpec((tb, f_pad), lambda i: (i, 0))]
        in_specs += [w_spec(op) for op in operands[1:]]

        return pl.pallas_call(
            _mlp_kernel,
            out_shape=jax.ShapeDtypeStruct((b_pad, t_pad), jnp.float32),
            grid=(b_pad // tb,),
            in_specs=in_specs,
            out_specs=pl.BlockSpec((tb, t_pad), lambda i: (i, 0)),
            compiler_params=pltpu.CompilerParams(
                dimension_semantics=("parallel",),
                vmem_limit_bytes=vmem_limit),
        )(*operands)

    try:
        out = build_and_call(True)      # single-buffered resident weights
    except Exception:
        out = build_and_call(False)     # defensive fallback: default buffering

    if return_padded:
        return out                      # (b_pad, t_pad); consumer slices
    return out[:B, :n_targets]


# ---------------------------------------------------------------------------
# Parameter init + pure-JAX reference
# ---------------------------------------------------------------------------
def init_params(key, n_features, hidden_size, n_targets):
    ks = jax.random.split(key, 32)
    p = {}
    bn_dims = [n_features, hidden_size, hidden_size, hidden_size, hidden_size]
    for i, dim in enumerate(bn_dims, start=1):
        k0, k1, k2, k3 = ks[4 * (i - 1):4 * i]
        p[f"bn{i}_gamma"] = jax.random.uniform(k0, (dim,), jnp.float32, 0.5, 1.5)
        p[f"bn{i}_beta"] = 0.1 * jax.random.normal(k1, (dim,), jnp.float32)
        p[f"bn{i}_mean"] = 0.1 * jax.random.normal(k2, (dim,), jnp.float32)
        p[f"bn{i}_var"] = jax.random.uniform(k3, (dim,), jnp.float32, 0.5, 1.5)

    def linear(key, out_dim, in_dim):
        kv, kg, kb = jax.random.split(key, 3)
        bound = 1.0 / jnp.sqrt(in_dim)
        v = jax.random.uniform(kv, (out_dim, in_dim), jnp.float32, -bound, bound)
        g = jax.random.uniform(kg, (out_dim,), jnp.float32, 0.5, 1.5)
        b = jax.random.uniform(kb, (out_dim,), jnp.float32, -bound, bound)
        return v, g, b

    lin_dims = [(hidden_size, n_features), (hidden_size, hidden_size),
                (hidden_size, hidden_size), (hidden_size, hidden_size),
                (n_targets, hidden_size)]
    for i, (od, idim) in enumerate(lin_dims, start=1):
        p[f"d{i}_v"], p[f"d{i}_g"], p[f"d{i}_b"] = linear(ks[20 + i], od, idim)
    return p


def reference_forward(x, params):
    """Pure-JAX reference of the same (eval-mode) forward pass."""
    h = x
    for i in range(1, 6):
        s, t = _fold_bn(params[f"bn{i}_gamma"], params[f"bn{i}_beta"],
                        params[f"bn{i}_mean"], params[f"bn{i}_var"])
        h = h * s + t                                    # BatchNorm1d (eval)
        # dropout = identity in eval mode
        w = _weight_norm(params[f"d{i}_v"], params[f"d{i}_g"])
        h = h @ w.T + params[f"d{i}_b"]                  # weight-normed Linear
        if i < 5:
            h = jnp.maximum(h, 0.0)                      # ReLU
    return h


# ---------------------------------------------------------------------------
if __name__ == "__main__":
    # small shapes consistent with the module: (batch, n_features)
    B, N_FEATURES, HIDDEN, N_TARGETS = 16, 32, 128, 206

    key = jax.random.PRNGKey(0)
    kx, kp = jax.random.split(key)
    x = jax.random.normal(kx, (B, N_FEATURES), jnp.float32)
    params = init_params(kp, N_FEATURES, HIDDEN, N_TARGETS)

    ref = reference_forward(x, params)

    # f32 matmul path — tight correctness check
    prep_f32 = prepare_params(params, compute_dtype=jnp.float32)
    out_f32 = jax.block_until_ready(modeldeep_forward(x, prep_f32))
    assert out_f32.shape == (B, N_TARGETS)
    assert jnp.allclose(out_f32, ref, atol=1e-4, rtol=1e-4), "f32 mismatch vs reference"

    # bf16 matmul path (MXU-native on all generations) — loosened tolerance
    prep_bf16 = prepare_params(params, compute_dtype=jnp.bfloat16)
    out_bf16 = jax.block_until_ready(modeldeep_forward(x, prep_bf16))
    assert out_bf16.shape == (B, N_TARGETS)
    assert jnp.allclose(out_bf16, ref, atol=5e-2, rtol=5e-2), "bf16 mismatch vs reference"

    # padded-output path (skips the trailing slice copy for large-B consumers)
    out_pad = jax.block_until_ready(
        modeldeep_forward(x, prep_bf16, return_padded=True))
    assert out_pad.shape[1] % 128 == 0
    assert jnp.allclose(out_pad[:B, :N_TARGETS], out_bf16, atol=1e-6)

    print("KERNEL_OK")
</pallas_src>

<mosaic_0001>
module attributes {stable_mosaic.version = 11 : i64} {
  func.func @_mlp_kernel(%arg0: i32, %arg1: memref<16x128xf32, #tpu.memory_space<vmem>>, %arg2: memref<128x128xf32, #tpu.memory_space<vmem>>, %arg3: memref<1x128xf32, #tpu.memory_space<vmem>>, %arg4: memref<128x128xf32, #tpu.memory_space<vmem>>, %arg5: memref<1x128xf32, #tpu.memory_space<vmem>>, %arg6: memref<128x128xf32, #tpu.memory_space<vmem>>, %arg7: memref<1x128xf32, #tpu.memory_space<vmem>>, %arg8: memref<128x128xf32, #tpu.memory_space<vmem>>, %arg9: memref<1x128xf32, #tpu.memory_space<vmem>>, %arg10: memref<128x256xf32, #tpu.memory_space<vmem>>, %arg11: memref<1x256xf32, #tpu.memory_space<vmem>>, %arg12: memref<16x256xf32, #tpu.memory_space<vmem>>) attributes {dimension_semantics = [#tpu.dimension_semantics<parallel>], iteration_bounds = array<i64: 1>, scalar_prefetch = 0 : i64, scratch_operands = 0 : i64, tpu.core_type = #tpu.core_type<tc>, window_params = [{transform_indices = @transform_0, window_bounds = array<i64: 16, 128>}, {pipeline_mode = #tpu.pipeline_mode<synchronous>, transform_indices = @transform_1, window_bounds = array<i64: 128, 128>}, {pipeline_mode = #tpu.pipeline_mode<synchronous>, transform_indices = @transform_2, window_bounds = array<i64: 1, 128>}, {pipeline_mode = #tpu.pipeline_mode<synchronous>, transform_indices = @transform_3, window_bounds = array<i64: 128, 128>}, {pipeline_mode = #tpu.pipeline_mode<synchronous>, transform_indices = @transform_4, window_bounds = array<i64: 1, 128>}, {pipeline_mode = #tpu.pipeline_mode<synchronous>, transform_indices = @transform_5, window_bounds = array<i64: 128, 128>}, {pipeline_mode = #tpu.pipeline_mode<synchronous>, transform_indices = @transform_6, window_bounds = array<i64: 1, 128>}, {pipeline_mode = #tpu.pipeline_mode<synchronous>, transform_indices = @transform_7, window_bounds = array<i64: 128, 128>}, {pipeline_mode = #tpu.pipeline_mode<synchronous>, transform_indices = @transform_8, window_bounds = array<i64: 1, 128>}, {pipeline_mode = #tpu.pipeline_mode<synchronous>, transform_indices = @transform_9, window_bounds = array<i64: 128, 256>}, {pipeline_mode = #tpu.pipeline_mode<synchronous>, transform_indices = @transform_10, window_bounds = array<i64: 1, 256>}, {transform_indices = @transform_11, window_bounds = array<i64: 16, 256>}]} {
    %c0 = arith.constant 0 : index
    %c0_0 = arith.constant 0 : index
    %0 = vector.load %arg1[%c0, %c0_0] : memref<16x128xf32, #tpu.memory_space<vmem>>, vector<16x128xf32>
    %c0_1 = arith.constant 0 : index
    %c0_2 = arith.constant 0 : index
    %1 = vector.load %arg2[%c0_1, %c0_2] : memref<128x128xf32, #tpu.memory_space<vmem>>, vector<128x128xf32>
    %cst = arith.constant dense<0.000000e+00> : vector<16x128xf32>
    %2 = tpu.matmul %0, %1, %cst {dimension_numbers = #tpu.dot_dimension_numbers<[1], [0], [0], [1], [0, 0, 1, 1], [], []>} : vector<16x128xf32>, vector<128x128xf32>, vector<16x128xf32> -> vector<16x128xf32>
    %c0_3 = arith.constant 0 : index
    %c0_4 = arith.constant 0 : index
    %3 = vector.load %arg3[%c0_3, %c0_4] : memref<1x128xf32, #tpu.memory_space<vmem>>, vector<1x128xf32>
    %4 = vector.broadcast %3 : vector<1x128xf32> to vector<16x128xf32>
    %5 = arith.addf %2, %4 : vector<16x128xf32>
    %cst_5 = arith.constant 0.000000e+00 : f32
    %6 = vector.broadcast %cst_5 : f32 to vector<16x128xf32>
    %7 = arith.maximumf %5, %6 : vector<16x128xf32>
    %c0_6 = arith.constant 0 : index
    %c0_7 = arith.constant 0 : index
    %8 = vector.load %arg4[%c0_6, %c0_7] : memref<128x128xf32, #tpu.memory_space<vmem>>, vector<128x128xf32>
    %cst_8 = arith.constant dense<0.000000e+00> : vector<16x128xf32>
    %9 = tpu.matmul %7, %8, %cst_8 {dimension_numbers = #tpu.dot_dimension_numbers<[1], [0], [0], [1], [0, 0, 1, 1], [], []>} : vector<16x128xf32>, vector<128x128xf32>, vector<16x128xf32> -> vector<16x128xf32>
    %c0_9 = arith.constant 0 : index
    %c0_10 = arith.constant 0 : index
    %10 = vector.load %arg5[%c0_9, %c0_10] : memref<1x128xf32, #tpu.memory_space<vmem>>, vector<1x128xf32>
    %11 = vector.broadcast %10 : vector<1x128xf32> to vector<16x128xf32>
    %12 = arith.addf %9, %11 : vector<16x128xf32>
    %cst_11 = arith.constant 0.000000e+00 : f32
    %13 = vector.broadcast %cst_11 : f32 to vector<16x128xf32>
    %14 = arith.maximumf %12, %13 : vector<16x128xf32>
    %c0_12 = arith.constant 0 : index
    %c0_13 = arith.constant 0 : index
    %15 = vector.load %arg6[%c0_12, %c0_13] : memref<128x128xf32, #tpu.memory_space<vmem>>, vector<128x128xf32>
    %cst_14 = arith.constant dense<0.000000e+00> : vector<16x128xf32>
    %16 = tpu.matmul %14, %15, %cst_14 {dimension_numbers = #tpu.dot_dimension_numbers<[1], [0], [0], [1], [0, 0, 1, 1], [], []>} : vector<16x128xf32>, vector<128x128xf32>, vector<16x128xf32> -> vector<16x128xf32>
    %c0_15 = arith.constant 0 : index
    %c0_16 = arith.constant 0 : index
    %17 = vector.load %arg7[%c0_15, %c0_16] : memref<1x128xf32, #tpu.memory_space<vmem>>, vector<1x128xf32>
    %18 = vector.broadcast %17 : vector<1x128xf32> to vector<16x128xf32>
    %19 = arith.addf %16, %18 : vector<16x128xf32>
    %cst_17 = arith.constant 0.000000e+00 : f32
    %20 = vector.broadcast %cst_17 : f32 to vector<16x128xf32>
    %21 = arith.maximumf %19, %20 : vector<16x128xf32>
    %c0_18 = arith.constant 0 : index
    %c0_19 = arith.constant 0 : index
    %22 = vector.load %arg8[%c0_18, %c0_19] : memref<128x128xf32, #tpu.memory_space<vmem>>, vector<128x128xf32>
    %cst_20 = arith.constant dense<0.000000e+00> : vector<16x128xf32>
    %23 = tpu.matmul %21, %22, %cst_20 {dimension_numbers = #tpu.dot_dimension_numbers<[1], [0], [0], [1], [0, 0, 1, 1], [], []>} : vector<16x128xf32>, vector<128x128xf32>, vector<16x128xf32> -> vector<16x128xf32>
    %c0_21 = arith.constant 0 : index
    %c0_22 = arith.constant 0 : index
    %24 = vector.load %arg9[%c0_21, %c0_22] : memref<1x128xf32, #tpu.memory_space<vmem>>, vector<1x128xf32>
    %25 = vector.broadcast %24 : vector<1x128xf32> to vector<16x128xf32>
    %26 = arith.addf %23, %25 : vector<16x128xf32>
    %cst_23 = arith.constant 0.000000e+00 : f32
    %27 = vector.broadcast %cst_23 : f32 to vector<16x128xf32>
    %28 = arith.maximumf %26, %27 : vector<16x128xf32>
    %c0_24 = arith.constant 0 : index
    %c0_25 = arith.constant 0 : index
    %29 = vector.load %arg10[%c0_24, %c0_25] : memref<128x256xf32, #tpu.memory_space<vmem>>, vector<128x256xf32>
    %cst_26 = arith.constant dense<0.000000e+00> : vector<16x256xf32>
    %30 = tpu.matmul %28, %29, %cst_26 {dimension_numbers = #tpu.dot_dimension_numbers<[1], [0], [0], [1], [0, 0, 1, 1], [], []>} : vector<16x128xf32>, vector<128x256xf32>, vector<16x256xf32> -> vector<16x256xf32>
    %c0_27 = arith.constant 0 : index
    %c0_28 = arith.constant 0 : index
    %31 = vector.load %arg11[%c0_27, %c0_28] : memref<1x256xf32, #tpu.memory_space<vmem>>, vector<1x256xf32>
    %32 = vector.broadcast %31 : vector<1x256xf32> to vector<16x256xf32>
    %33 = arith.addf %30, %32 : vector<16x256xf32>
    %c0_29 = arith.constant 0 : index
    %c0_30 = arith.constant 0 : index
    %34 = vector.load %arg12[%c0_29, %c0_30] : memref<16x256xf32, #tpu.memory_space<vmem>>, vector<16x256xf32>
    tpu.vector_store %arg12[%c0_29, %c0_30], %33 {strides = array<i32>} : memref<16x256xf32, #tpu.memory_space<vmem>>, vector<16x256xf32>,
    return
  }
  func.func @transform_0(%arg0: i32) -> (i32, i32) {
    %c0_i32 = arith.constant 0 : i32
    %c0_i32_0 = arith.constant 0 : i32
    return %arg0, %c0_i32 : i32, i32
  }
  func.func @transform_1(%arg0: i32) -> (i32, i32) {
    %c0_i32 = arith.constant 0 : i32
    %c0_i32_0 = arith.constant 0 : i32
    %c0_i32_1 = arith.constant 0 : i32
    return %c0_i32, %c0_i32_0 : i32, i32
  }
  func.func @transform_2(%arg0: i32) -> (i32, i32) {
    %c0_i32 = arith.constant 0 : i32
    %c0_i32_0 = arith.constant 0 : i32
    %c0_i32_1 = arith.constant 0 : i32
    return %c0_i32, %c0_i32_0 : i32, i32
  }
  func.func @transform_3(%arg0: i32) -> (i32, i32) {
    %c0_i32 = arith.constant 0 : i32
    %c0_i32_0 = arith.constant 0 : i32
    %c0_i32_1 = arith.constant 0 : i32
    return %c0_i32, %c0_i32_0 : i32, i32
  }
  func.func @transform_4(%arg0: i32) -> (i32, i32) {
    %c0_i32 = arith.constant 0 : i32
    %c0_i32_0 = arith.constant 0 : i32
    %c0_i32_1 = arith.constant 0 : i32
    return %c0_i32, %c0_i32_0 : i32, i32
  }
  func.func @transform_5(%arg0: i32) -> (i32, i32) {
    %c0_i32 = arith.constant 0 : i32
    %c0_i32_0 = arith.constant 0 : i32
    %c0_i32_1 = arith.constant 0 : i32
    return %c0_i32, %c0_i32_0 : i32, i32
  }
  func.func @transform_6(%arg0: i32) -> (i32, i32) {
    %c0_i32 = arith.constant 0 : i32
    %c0_i32_0 = arith.constant 0 : i32
    %c0_i32_1 = arith.constant 0 : i32
    return %c0_i32, %c0_i32_0 : i32, i32
  }
  func.func @transform_7(%arg0: i32) -> (i32, i32) {
    %c0_i32 = arith.constant 0 : i32
    %c0_i32_0 = arith.constant 0 : i32
    %c0_i32_1 = arith.constant 0 : i32
    return %c0_i32, %c0_i32_0 : i32, i32
  }
  func.func @transform_8(%arg0: i32) -> (i32, i32) {
    %c0_i32 = arith.constant 0 : i32
    %c0_i32_0 = arith.constant 0 : i32
    %c0_i32_1 = arith.constant 0 : i32
    return %c0_i32, %c0_i32_0 : i32, i32
  }
  func.func @transform_9(%arg0: i32) -> (i32, i32) {
    %c0_i32 = arith.constant 0 : i32
    %c0_i32_0 = arith.constant 0 : i32
    %c0_i32_1 = arith.constant 0 : i32
    return %c0_i32, %c0_i32_0 : i32, i32
  }
  func.func @transform_10(%arg0: i32) -> (i32, i32) {
    %c0_i32 = arith.constant 0 : i32
    %c0_i32_0 = arith.constant 0 : i32
    %c0_i32_1 = arith.constant 0 : i32
    return %c0_i32, %c0_i32_0 : i32, i32
  }
  func.func @transform_11(%arg0: i32) -> (i32, i32) {
    %c0_i32 = arith.constant 0 : i32
    %c0_i32_0 = arith.constant 0 : i32
    return %arg0, %c0_i32 : i32, i32
  }
}

module attributes {stable_mosaic.version = 11 : i64} {
  func.func @_mlp_kernel(%arg0: i32, %arg1: memref<16x128xf32, #tpu.memory_space<vmem>>, %arg2: memref<128x128xf32, #tpu.memory_space<vmem>>, %arg3: memref<1x128xf32, #tpu.memory_space<vmem>>, %arg4: memref<128x128xf32, #tpu.memory_space<vmem>>, %arg5: memref<1x128xf32, #tpu.memory_space<vmem>>, %arg6: memref<128x128xf32, #tpu.memory_space<vmem>>, %arg7: memref<1x128xf32, #tpu.memory_space<vmem>>, %arg8: memref<128x128xf32, #tpu.memory_space<vmem>>, %arg9: memref<1x128xf32, #tpu.memory_space<vmem>>, %arg10: memref<128x256xf32, #tpu.memory_space<vmem>>, %arg11: memref<1x256xf32, #tpu.memory_space<vmem>>, %arg12: memref<16x256xf32, #tpu.memory_space<vmem>>) attributes {dimension_semantics = [#tpu.dimension_semantics<parallel>], iteration_bounds = array<i64: 1>, scalar_prefetch = 0 : i64, scratch_operands = 0 : i64, tpu.core_type = #tpu.core_type<tc>, window_params = [{transform_indices = @transform_0, window_bounds = array<i64: 16, 128>}, {pipeline_mode = #tpu.pipeline_mode<synchronous>, transform_indices = @transform_1, window_bounds = array<i64: 128, 128>}, {pipeline_mode = #tpu.pipeline_mode<synchronous>, transform_indices = @transform_2, window_bounds = array<i64: 1, 128>}, {pipeline_mode = #tpu.pipeline_mode<synchronous>, transform_indices = @transform_3, window_bounds = array<i64: 128, 128>}, {pipeline_mode = #tpu.pipeline_mode<synchronous>, transform_indices = @transform_4, window_bounds = array<i64: 1, 128>}, {pipeline_mode = #tpu.pipeline_mode<synchronous>, transform_indices = @transform_5, window_bounds = array<i64: 128, 128>}, {pipeline_mode = #tpu.pipeline_mode<synchronous>, transform_indices = @transform_6, window_bounds = array<i64: 1, 128>}, {pipeline_mode = #tpu.pipeline_mode<synchronous>, transform_indices = @transform_7, window_bounds = array<i64: 128, 128>}, {pipeline_mode = #tpu.pipeline_mode<synchronous>, transform_indices = @transform_8, window_bounds = array<i64: 1, 128>}, {pipeline_mode = #tpu.pipeline_mode<synchronous>, transform_indices = @transform_9, window_bounds = array<i64: 128, 256>}, {pipeline_mode = #tpu.pipeline_mode<synchronous>, transform_indices = @transform_10, window_bounds = array<i64: 1, 256>}, {transform_indices = @transform_11, window_bounds = array<i64: 16, 256>}]} {
    %c0 = arith.constant 0 : index
    %c0_0 = arith.constant 0 : index
    %0 = vector.load %arg1[%c0, %c0_0] : memref<16x128xf32, #tpu.memory_space<vmem>>, vector<16x128xf32>
    %c0_1 = arith.constant 0 : index
    %c0_2 = arith.constant 0 : index
    %1 = vector.load %arg2[%c0_1, %c0_2] : memref<128x128xf32, #tpu.memory_space<vmem>>, vector<128x128xf32>
    %cst = arith.constant dense<0.000000e+00> : vector<16x128xf32>
    %2 = tpu.matmul %0, %1, %cst {dimension_numbers = #tpu.dot_dimension_numbers<[1], [0], [0], [1], [0, 0, 1, 1], [], []>} : vector<16x128xf32>, vector<128x128xf32>, vector<16x128xf32> -> vector<16x128xf32>
    %c0_3 = arith.constant 0 : index
    %c0_4 = arith.constant 0 : index
    %3 = vector.load %arg3[%c0_3, %c0_4] : memref<1x128xf32, #tpu.memory_space<vmem>>, vector<1x128xf32>
    %4 = vector.broadcast %3 : vector<1x128xf32> to vector<16x128xf32>
    %5 = arith.addf %2, %4 : vector<16x128xf32>
    %cst_5 = arith.constant 0.000000e+00 : f32
    %6 = vector.broadcast %cst_5 : f32 to vector<16x128xf32>
    %7 = arith.maximumf %5, %6 : vector<16x128xf32>
    %c0_6 = arith.constant 0 : index
    %c0_7 = arith.constant 0 : index
    %8 = vector.load %arg4[%c0_6, %c0_7] : memref<128x128xf32, #tpu.memory_space<vmem>>, vector<128x128xf32>
    %cst_8 = arith.constant dense<0.000000e+00> : vector<16x128xf32>
    %9 = tpu.matmul %7, %8, %cst_8 {dimension_numbers = #tpu.dot_dimension_numbers<[1], [0], [0], [1], [0, 0, 1, 1], [], []>} : vector<16x128xf32>, vector<128x128xf32>, vector<16x128xf32> -> vector<16x128xf32>
    %c0_9 = arith.constant 0 : index
    %c0_10 = arith.constant 0 : index
    %10 = vector.load %arg5[%c0_9, %c0_10] : memref<1x128xf32, #tpu.memory_space<vmem>>, vector<1x128xf32>
    %11 = vector.broadcast %10 : vector<1x128xf32> to vector<16x128xf32>
    %12 = arith.addf %9, %11 : vector<16x128xf32>
    %cst_11 = arith.constant 0.000000e+00 : f32
    %13 = vector.broadcast %cst_11 : f32 to vector<16x128xf32>
    %14 = arith.maximumf %12, %13 : vector<16x128xf32>
    %c0_12 = arith.constant 0 : index
    %c0_13 = arith.constant 0 : index
    %15 = vector.load %arg6[%c0_12, %c0_13] : memref<128x128xf32, #tpu.memory_space<vmem>>, vector<128x128xf32>
    %cst_14 = arith.constant dense<0.000000e+00> : vector<16x128xf32>
    %16 = tpu.matmul %14, %15, %cst_14 {dimension_numbers = #tpu.dot_dimension_numbers<[1], [0], [0], [1], [0, 0, 1, 1], [], []>} : vector<16x128xf32>, vector<128x128xf32>, vector<16x128xf32> -> vector<16x128xf32>
    %c0_15 = arith.constant 0 : index
    %c0_16 = arith.constant 0 : index
    %17 = vector.load %arg7[%c0_15, %c0_16] : memref<1x128xf32, #tpu.memory_space<vmem>>, vector<1x128xf32>
    %18 = vector.broadcast %17 : vector<1x128xf32> to vector<16x128xf32>
    %19 = arith.addf %16, %18 : vector<16x128xf32>
    %cst_17 = arith.constant 0.000000e+00 : f32
    %20 = vector.broadcast %cst_17 : f32 to vector<16x128xf32>
    %21 = arith.maximumf %19, %20 : vector<16x128xf32>
    %c0_18 = arith.constant 0 : index
    %c0_19 = arith.constant 0 : index
    %22 = vector.load %arg8[%c0_18, %c0_19] : memref<128x128xf32, #tpu.memory_space<vmem>>, vector<128x128xf32>
    %cst_20 = arith.constant dense<0.000000e+00> : vector<16x128xf32>
    %23 = tpu.matmul %21, %22, %cst_20 {dimension_numbers = #tpu.dot_dimension_numbers<[1], [0], [0], [1], [0, 0, 1, 1], [], []>} : vector<16x128xf32>, vector<128x128xf32>, vector<16x128xf32> -> vector<16x128xf32>
    %c0_21 = arith.constant 0 : index
    %c0_22 = arith.constant 0 : index
    %24 = vector.load %arg9[%c0_21, %c0_22] : memref<1x128xf32, #tpu.memory_space<vmem>>, vector<1x128xf32>
    %25 = vector.broadcast %24 : vector<1x128xf32> to vector<16x128xf32>
    %26 = arith.addf %23, %25 : vector<16x128xf32>
    %cst_23 = arith.constant 0.000000e+00 : f32
    %27 = vector.broadcast %cst_23 : f32 to vector<16x128xf32>
    %28 = arith.maximumf %26, %27 : vector<16x128xf32>
    %c0_24 = arith.constant 0 : index
    %c0_25 = arith.constant 0 : index
    %29 = vector.load %arg10[%c0_24, %c0_25] : memref<128x256xf32, #tpu.memory_space<vmem>>, vector<128x256xf32>
    %cst_26 = arith.constant dense<0.000000e+00> : vector<16x256xf32>
    %30 = tpu.matmul %28, %29, %cst_26 {dimension_numbers = #tpu.dot_dimension_numbers<[1], [0], [0], [1], [0, 0, 1, 1], [], []>} : vector<16x128xf32>, vector<128x256xf32>, vector<16x256xf32> -> vector<16x256xf32>
    %c0_27 = arith.constant 0 : index
    %c0_28 = arith.constant 0 : index
    %31 = vector.load %arg11[%c0_27, %c0_28] : memref<1x256xf32, #tpu.memory_space<vmem>>, vector<1x256xf32>
    %32 = vector.broadcast %31 : vector<1x256xf32> to vector<16x256xf32>
    %33 = arith.addf %30, %32 : vector<16x256xf32>
    %c0_29 = arith.constant 0 : index
    %c0_30 = arith.constant 0 : index
    %34 = vector.load %arg12[%c0_29, %c0_30] : memref<16x256xf32, #tpu.memory_space<vmem>>, vector<16x256xf32>
    tpu.vector_store %arg12[%c0_29, %c0_30], %33 {strides = array<i32>} : memref<16x256xf32, #tpu.memory_space<vmem>>, vector<16x256xf32>,
    return
  }
  func.func @transform_0(%arg0: i32) -> (i32, i32) {
    %c0_i32 = arith.constant 0 : i32
    %c0_i32_0 = arith.constant 0 : i32
    return %arg0, %c0_i32 : i32, i32
  }
  func.func @transform_1(%arg0: i32) -> (i32, i32) {
    %c0_i32 = arith.constant 0 : i32
    %c0_i32_0 = arith.constant 0 : i32
    %c0_i32_1 = arith.constant 0 : i32
    return %c0_i32, %c0_i32_0 : i32, i32
  }
  func.func @transform_2(%arg0: i32) -> (i32, i32) {
    %c0_i32 = arith.constant 0 : i32
    %c0_i32_0 = arith.constant 0 : i32
    %c0_i32_1 = arith.constant 0 : i32
    return %c0_i32, %c0_i32_0 : i32, i32
  }
  func.func @transform_3(%arg0: i32) -> (i32, i32) {
    %c0_i32 = arith.constant 0 : i32
    %c0_i32_0 = arith.constant 0 : i32
    %c0_i32_1 = arith.constant 0 : i32
    return %c0_i32, %c0_i32_0 : i32, i32
  }
  func.func @transform_4(%arg0: i32) -> (i32, i32) {
    %c0_i32 = arith.constant 0 : i32
    %c0_i32_0 = arith.constant 0 : i32
    %c0_i32_1 = arith.constant 0 : i32
    return %c0_i32, %c0_i32_0 : i32, i32
  }
  func.func @transform_5(%arg0: i32) -> (i32, i32) {
    %c0_i32 = arith.constant 0 : i32
    %c0_i32_0 = arith.constant 0 : i32
    %c0_i32_1 = arith.constant 0 : i32
    return %c0_i32, %c0_i32_0 : i32, i32
  }
  func.func @transform_6(%arg0: i32) -> (i32, i32) {
    %c0_i32 = arith.constant 0 : i32
    %c0_i32_0 = arith.constant 0 : i32
    %c0_i32_1 = arith.constant 0 : i32
    return %c0_i32, %c0_i32_0 : i32, i32
  }
  func.func @transform_7(%arg0: i32) -> (i32, i32) {
    %c0_i32 = arith.constant 0 : i32
    %c0_i32_0 = arith.constant 0 : i32
    %c0_i32_1 = arith.constant 0 : i32
    return %c0_i32, %c0_i32_0 : i32, i32
  }
  func.func @transform_8(%arg0: i32) -> (i32, i32) {
    %c0_i32 = arith.constant 0 : i32
    %c0_i32_0 = arith.constant 0 : i32
    %c0_i32_1 = arith.constant 0 : i32
    return %c0_i32, %c0_i32_0 : i32, i32
  }
  func.func @transform_9(%arg0: i32) -> (i32, i32) {
    %c0_i32 = arith.constant 0 : i32
    %c0_i32_0 = arith.constant 0 : i32
    %c0_i32_1 = arith.constant 0 : i32
    return %c0_i32, %c0_i32_0 : i32, i32
  }
  func.func @transform_10(%arg0: i32) -> (i32, i32) {
    %c0_i32 = arith.constant 0 : i32
    %c0_i32_0 = arith.constant 0 : i32
    %c0_i32_1 = arith.constant 0 : i32
    return %c0_i32, %c0_i32_0 : i32, i32
  }
  func.func @transform_11(%arg0: i32) -> (i32, i32) {
    %c0_i32 = arith.constant 0 : i32
    %c0_i32_0 = arith.constant 0 : i32
    return %arg0, %c0_i32 : i32, i32
  }
}

</mosaic_0001>

<bundles_post_ra>
// kernel: tpu_custom_call.1
= control target key start
LH: loop header
LB: loop body
LE: loop exit
PB: predicated region body
PF: predicated region fallthrough
CT: control target
= control target key end

     0   :  { %16 = vsyncpa [#allocation3], 0  ;;  %s1433_s0 = inlined_call_operand.hbm [shape: f32[16,128], index: 0, kind: input, shape index: {}]   ;;  %s1434_s1 = inlined_call_operand.hbm [shape: f32[128,128], index: 1, kind: input, shape index: {}]   ;;  %s1435_s2 = inlined_call_operand.vmem [shape: f32[1,128], index: 2, kind: input, shape index: {}]   ;;  %s1436_s3 = inlined_call_operand.hbm [shape: f32[128,128], index: 3, kind: input, shape index: {}]   ;;  %s1437_s4 = inlined_call_operand.vmem [shape: f32[1,128], index: 4, kind: input, shape index: {}]   ;;  %s1438_s5 = inlined_call_operand.hbm [shape: f32[128,128], index: 5, kind: input, shape index: {}]   ;;  %s1439_s6 = inlined_call_operand.vmem [shape: f32[1,128], index: 6, kind: input, shape index: {}]   ;;  %s1440_s7 = inlined_call_operand.hbm [shape: f32[128,128], index: 7, kind: input, shape index: {}]   ;;  %s1441_s8 = inlined_call_operand.vmem [shape: f32[1,128], index: 8, kind: input, shape index: {}]   ;;  %s1442_s9 = inlined_call_operand.hbm [shape: f32[128,256], index: 9, kind: input, shape index: {}]   ;;  %s1443_s10 = inlined_call_operand.vmem [shape: f32[1,256], index: 10, kind: input, shape index: {}]   ;;  %s1444_s11 = inlined_call_operand.hbm [shape: f32[16,256], index: 11, kind: output, shape index: {}]  }
   0x1   :  { %17 = vsyncpa [#allocation6], 0 }
   0x2   :  { %18 = vsyncpa [#allocation9], 0 }
   0x3   :  { %19 = vsyncpa [#allocation12], 0 }
   0x4   :  { %20 = vsyncpa [#allocation4], 0  ;;  %s1220_s17 = smov [#allocation5]   ;;  %s1221_s19 = smov [#allocation8]  }
   0x5   :  { %s38_s18 = sshll.u32 %s1220_s17, 4  ;;  %s66_s20 = sshll.u32 %s1221_s19, 4  ;;  %s39_s18 = int_to_ptr.vmem [resolvable:$true] %s38_s18  ;;  %s1292_s20 = int_to_ptr.vmem [resolvable:$true] %s66_s20 }
   0x6   :  { %s1056_s23 = scalar_lea.hbm %s1434_s1, 2048 }
   0x7   :  { %p1057_p0 = scmp.ne.s32.totalorder %s1434_s1, %s1056_s23  ;;  %p1060_p1 = scmp.lt.u32.totalorder %s1056_s23, %s1434_s1 }
   0x9   :  { %p1062_p2 = pnand %p1060_p1, %p1057_p0 }
   0xb   :  { %1065 = shalt.err (!%p1062_p2)
}
   0xc   :  { %s1066_s28 = scalar_lea.vmem %s39_s18, 2048  ;;  %p1071_p4 = scmp.lt.s32.totalorder %s39_s18, %s39_s18 }
   0xd   :  { %p1067_p3 = scmp.ne.s32.totalorder %s39_s18, %s1066_s28  ;;  %p1072_p5 = scmp.lt.s32.totalorder %s1066_s28, %s1066_s28 }
   0xf   :  { %p1073_p6 = por %p1072_p5, %p1071_p4 }
  0x11   :  { %p1074_p7 = pnand %p1073_p6, %p1067_p3 }
  0x13   :  { %1077 = shalt.err (!%p1074_p7)
}
  0x14   :  { %s1222_s29 = smov 128   ;;  %s1223_s30 = smov 8  }
  0x15   :  { %44 = dma.hbm_to_vmem [thread:$0]  %s1434_s1, 2048, %s39_s18, [#allocation6], %s1222_s29, %s1222_s29, %s1223_s30  }
  0x16   :  { %s1078_s16 = scalar_lea.hbm %s1438_s5, 2048 }
  0x17   :  { %p1079_p8 = scmp.ne.s32.totalorder %s1438_s5, %s1078_s16  ;;  %p1082_p9 = scmp.lt.u32.totalorder %s1078_s16, %s1438_s5 }
  0x19   :  { %p1084_p10 = pnand %p1082_p9, %p1079_p8 }
  0x1b   :  { %1087 = shalt.err (!%p1084_p10)
}
  0x1c   :  { %s1088_s23 = scalar_lea.vmem %s1292_s20, 2048  ;;  %p1093_p12 = scmp.lt.s32.totalorder %s1292_s20, %s1292_s20 }
  0x1d   :  { %p1089_p11 = scmp.ne.s32.totalorder %s1292_s20, %s1088_s23  ;;  %p1094_p13 = scmp.lt.s32.totalorder %s1088_s23, %s1088_s23 }
  0x1f   :  { %p1095_p0 = por %p1094_p13, %p1093_p12 }
  0x21   :  { %p1096_p1 = pnand %p1095_p0, %p1089_p11 }
  0x23   :  { %1099 = shalt.err (!%p1096_p1)
}
  0x24   :  { %72 = dma.hbm_to_vmem [thread:$0]  %s1438_s5, 2048, %s1292_s20, [#allocation9], %s1222_s29, %s1222_s29, %s1223_s30  }
  0x25   :  { %s1224_s24 = smov [#allocation2]   ;;  %s1225_s26 = smov [#allocation7]  }
  0x26   :  { %s26_s25 = sshll.u32 %s1224_s24, 4  ;;  %s52_s27 = sshll.u32 %s1225_s26, 4  ;;  %s27_s25 = int_to_ptr.vmem [resolvable:$true] %s26_s25  ;;  %s1329_s27 = int_to_ptr.vmem [resolvable:$true] %s52_s27 }
  0x27   :  { %s1100_s13 = scalar_lea.hbm %s1433_s0, 256 }
  0x28   :  { %p1101_p2 = scmp.ne.s32.totalorder %s1433_s0, %s1100_s13  ;;  %p1104_p3 = scmp.lt.u32.totalorder %s1100_s13, %s1433_s0 }
  0x2a   :  { %p1106_p4 = pnand %p1104_p3, %p1101_p2 }
  0x2c   :  { %1109 = shalt.err (!%p1106_p4)
}
  0x2d   :  { %s1110_s5 = scalar_lea.vmem %s27_s25, 256  ;;  %p1115_p6 = scmp.lt.s32.totalorder %s27_s25, %s27_s25 }
  0x2e   :  { %p1111_p5 = scmp.ne.s32.totalorder %s27_s25, %s1110_s5  ;;  %p1116_p7 = scmp.lt.s32.totalorder %s1110_s5, %s1110_s5 }
  0x30   :  { %p1117_p8 = por %p1116_p7, %p1115_p6 }
  0x32   :  { %p1118_p9 = pnand %p1117_p8, %p1111_p5 }
  0x34   :  { %1121 = shalt.err (!%p1118_p9)
}
  0x35   :  { %32 = dma.hbm_to_vmem [thread:$0]  %s1433_s0, 256, %s27_s25, [#allocation3], %s1222_s29, %s1222_s29, %s1223_s30  }
  0x36   :  { %s1122_s23 = scalar_lea.hbm %s1436_s3, 2048 }
  0x37   :  { %p1123_p10 = scmp.ne.s32.totalorder %s1436_s3, %s1122_s23  ;;  %p1126_p11 = scmp.lt.u32.totalorder %s1122_s23, %s1436_s3 }
  0x39   :  { %p1128_p12 = pnand %p1126_p11, %p1123_p10 }
  0x3b   :  { %1131 = shalt.err (!%p1128_p12)
}
  0x3c   :  { %s1132_s28 = scalar_lea.vmem %s1329_s27, 2048  ;;  %p1137_p0 = scmp.lt.s32.totalorder %s1329_s27, %s1329_s27 }
  0x3d   :  { %p1133_p13 = scmp.ne.s32.totalorder %s1329_s27, %s1132_s28  ;;  %p1138_p1 = scmp.lt.s32.totalorder %s1132_s28, %s1132_s28 }
  0x3f   :  { %p1139_p2 = por %p1138_p1, %p1137_p0 }
  0x41   :  { %p1140_p3 = pnand %p1139_p2, %p1133_p13 }
  0x43   :  { %1143 = shalt.err (!%p1140_p3)
}
  0x44   :  { %58 = dma.hbm_to_vmem [thread:$0]  %s1436_s3, 2048, %s1329_s27, [#allocation6], %s1222_s29, %s1222_s29, %s1223_s30  }
  0x45   :  { %s1226_s12 = smov [#allocation10]   ;;  %s1227_s14 = smov [#allocation11]  }
  0x46   :  { %s80_s13 = sshll.u32 %s1226_s12, 4  ;;  %s94_s15 = sshll.u32 %s1227_s14, 4  ;;  %s81_s13 = int_to_ptr.vmem [resolvable:$true] %s80_s13  ;;  %s1366_s15 = int_to_ptr.vmem [resolvable:$true] %s94_s15 }
  0x47   :  { %s1144_s5 = scalar_lea.hbm %s1440_s7, 2048 }
  0x48   :  { %p1145_p4 = scmp.ne.s32.totalorder %s1440_s7, %s1144_s5  ;;  %p1148_p5 = scmp.lt.u32.totalorder %s1144_s5, %s1440_s7 }
  0x4a   :  { %p1150_p6 = pnand %p1148_p5, %p1145_p4 }
  0x4c   :  { %1153 = shalt.err (!%p1150_p6)
}
  0x4d   :  { %s1154_s3 = scalar_lea.vmem %s81_s13, 2048  ;;  %p1159_p8 = scmp.lt.s32.totalorder %s81_s13, %s81_s13 }
  0x4e   :  { %p1155_p7 = scmp.ne.s32.totalorder %s81_s13, %s1154_s3  ;;  %p1160_p9 = scmp.lt.s32.totalorder %s1154_s3, %s1154_s3 }
  0x50   :  { %p1161_p10 = por %p1160_p9, %p1159_p8 }
  0x52   :  { %p1162_p11 = pnand %p1161_p10, %p1155_p7 }
  0x54   :  { %1165 = shalt.err (!%p1162_p11)
}
  0x55   :  { %86 = dma.hbm_to_vmem [thread:$0]  %s1440_s7, 2048, %s81_s13, [#allocation9], %s1222_s29, %s1222_s29, %s1223_s30  }
  0x56   :  { %s1166_s24 = scalar_lea.hbm %s1442_s9, 4096 }
  0x57   :  { %p1167_p12 = scmp.ne.s32.totalorder %s1442_s9, %s1166_s24  ;;  %p1170_p13 = scmp.lt.u32.totalorder %s1166_s24, %s1442_s9 }
  0x59   :  { %p1172_p0 = pnand %p1170_p13, %p1167_p12 }
  0x5b   :  { %1175 = shalt.err (!%p1172_p0)
}
  0x5c   :  { %s1176_s12 = scalar_lea.vmem %s1366_s15, 4096  ;;  %p1181_p2 = scmp.lt.s32.totalorder %s1366_s15, %s1366_s15 }
  0x5d   :  { %p1177_p1 = scmp.ne.s32.totalorder %s1366_s15, %s1176_s12  ;;  %p1182_p3 = scmp.lt.s32.totalorder %s1176_s12, %s1176_s12 }
  0x5f   :  { %p1183_p4 = por %p1182_p3, %p1181_p2 }
  0x61   :  { %p1184_p5 = pnand %p1183_p4, %p1177_p1 }
  0x63   :  { %1187 = shalt.err (!%p1184_p5)
}
  0x64   :  { %s1228_s7 = smov 256   ;;  %s1229_s29 = smov 16  }
  0x65   :  { %100 = dma.hbm_to_vmem [thread:$0]  %s1442_s9, 4096, %s1366_s15, [#allocation12], %s1228_s7, %s1228_s7, %s1229_s29  }
  0x66   :  { %1210 = dma.done.wait [#allocation3], 256  }
  0x67   :  { %1211 = vsyncadd [#allocation3], 4294967040 }
  0x68   :  { %1212 = dma.done.wait [#allocation6], 4096  }
  0x69   :  { %1213 = vsyncadd [#allocation6], 4294963200 }
  0x6a   :  { %1214 = dma.done.wait [#allocation9], 4096  }
  0x6b   :  { %1215 = vsyncadd [#allocation9], 4294963200 }
  0x6c   :  { %1216 = dma.done.wait [#allocation12], 4096  }
  0x6d   :  { %1217 = vsyncadd [#allocation12], 4294963200  ;;  %v123_v0 = vld [vmem:[#allocation5] sm:$0xff]  ;;  %v124_v1 = vld [vmem:[#allocation5 + $0x8] sm:$0xff] }
  0x6e   :  { %v125_v2 = vld [vmem:[#allocation5 + $0x10] sm:$0xff]  ;;  %v884_v3 = vpack.c.bf16 %v124_v1, %v123_v0  ;;  %v126_v4 = vld [vmem:[#allocation5 + $0x18] sm:$0xff]  ;;  %v127_v6 = vld [vmem:[#allocation5 + $0x20] sm:$0xff] }
  0x6f   :  { %v888_v5 = vpack.c.bf16 %v126_v4, %v125_v2  ;;  %v128_v7 = vld [vmem:[#allocation5 + $0x28] sm:$0xff]  ;;  %v121_v9 = vld [vmem:[#allocation2] sm:$0xff]  ;;  %v130_v11 = vld [vmem:[#allocation5 + $0x38] sm:$0xff] }
  0x70   :  { %885 = vmatprep.subr.bf16.mxu1 %v884_v3  ;;  %v892_v8 = vpack.c.bf16 %v128_v7, %v127_v6  ;;  %v129_v10 = vld [vmem:[#allocation5 + $0x30] sm:$0xff]  ;;  %776 = vmatprep.mubr.f32.mxu1 %v121_v9  ;;  %v131_v13 = vld [vmem:[#allocation5 + $0x40] sm:$0xff]  ;;  %v132_v14 = vld [vmem:[#allocation5 + $0x48] sm:$0xff] }
  0x71   :  { %887 = vmatpush3.bf16.msra.mxu1 %v884_v3  ;;  %v896_v12 = vpack.c.bf16 %v130_v11, %v129_v10  ;;  %v900_v15 = vpack.c.bf16 %v132_v14, %v131_v13  ;;  %v133_v16 = vld [vmem:[#allocation5 + $0x50] sm:$0xff]  ;;  %v134_v17 = vld [vmem:[#allocation5 + $0x58] sm:$0xff]  ;;  %v135_v19 = vld [vmem:[#allocation5 + $0x60] sm:$0xff] }
  0x72   :  { %889 = vmatprep.subr.bf16.mxu1 %v888_v5  ;;  %v904_v18 = vpack.c.bf16 %v134_v17, %v133_v16  ;;  %v136_v20 = vld [vmem:[#allocation5 + $0x68] sm:$0xff]  ;;  %v137_v22 = vld [vmem:[#allocation5 + $0x70] sm:$0xff]  ;;  %v138_v23 = vld [vmem:[#allocation5 + $0x78] sm:$0xff] }
  0x73   :  { %v908_v21 = vpack.c.bf16 %v136_v20, %v135_v19  ;;  %v912_v24 = vpack.c.bf16 %v138_v23, %v137_v22  ;;  %v223_v25 = vld [vmem:[#allocation7] sm:$0xff]  ;;  %v224_v26 = vld [vmem:[#allocation7 + $0x8] sm:$0xff]  ;;  %v225_v28 = vld [vmem:[#allocation7 + $0x10] sm:$0xff] }
  0x74   :  { %v916_v27 = vpack.c.bf16 %v224_v26, %v223_v25  ;;  %v226_v29 = vld [vmem:[#allocation7 + $0x18] sm:$0xff]  ;;  %v227_v32 = vld [vmem:[#allocation7 + $0x20] sm:$0xff]  ;;  %v228_v33 = vld [vmem:[#allocation7 + $0x28] sm:$0xff] }
  0x75   :  { %891 = vmatpush3.bf16.msra.mxu1 %v888_v5  ;;  %v122_v30 = vld [vmem:[#allocation2 + $0x8] sm:$0xff]  ;;  %v920_v31 = vpack.c.bf16 %v226_v29, %v225_v28  ;;  %v924_v34 = vpack.c.bf16 %v228_v33, %v227_v32  ;;  %v229_v35 = vld [vmem:[#allocation7 + $0x30] sm:$0xff]  ;;  %v231_v38 = vld [vmem:[#allocation7 + $0x40] sm:$0xff] }
  0x76   :  { %893 = vmatprep.subr.bf16.mxu1 %v892_v8  ;;  %v230_v36 = vld [vmem:[#allocation7 + $0x38] sm:$0xff]  ;;  %v232_v39 = vld [vmem:[#allocation7 + $0x48] sm:$0xff]  ;;  %v233_v41 = vld [vmem:[#allocation7 + $0x50] sm:$0xff] }
  0x77   :  { %v928_v37 = vpack.c.bf16 %v230_v36, %v229_v35  ;;  %v932_v40 = vpack.c.bf16 %v232_v39, %v231_v38  ;;  %v234_v42 = vld [vmem:[#allocation7 + $0x58] sm:$0xff]  ;;  %v235_v44 = vld [vmem:[#allocation7 + $0x60] sm:$0xff]  ;;  %v236_v45 = vld [vmem:[#allocation7 + $0x68] sm:$0xff] }
  0x78   :  { %v936_v43 = vpack.c.bf16 %v234_v42, %v233_v41  ;;  %v940_v46 = vpack.c.bf16 %v236_v45, %v235_v44  ;;  %v237_v47 = vld [vmem:[#allocation7 + $0x70] sm:$0xff]  ;;  %v238_v48 = vld [vmem:[#allocation7 + $0x78] sm:$0xff]  ;;  %v323_v50 = vld [vmem:[#allocation8] sm:$0xff] }
  0x79   :  { %895 = vmatpush3.bf16.msra.mxu1 %v892_v8  ;;  %v944_v49 = vpack.c.bf16 %v238_v48, %v237_v47  ;;  %v324_v51 = vld [vmem:[#allocation8 + $0x8] sm:$0xff]  ;;  %v325_v52 = vld [vmem:[#allocation8 + $0x10] sm:$0xff]  ;;  %v326_v54 = vld [vmem:[#allocation8 + $0x18] sm:$0xff] }
  0x7a   :  { %897 = vmatprep.subr.bf16.mxu1 %v896_v12  ;;  %v948_v53 = vpack.c.bf16 %v324_v51, %v323_v50  ;;  %v952_v55 = vpack.c.bf16 %v326_v54, %v325_v52  ;;  %v327_v56 = vld [vmem:[#allocation8 + $0x20] sm:$0xff]  ;;  %v328_v57 = vld [vmem:[#allocation8 + $0x28] sm:$0xff]  ;;  %v329_v59 = vld [vmem:[#allocation8 + $0x30] sm:$0xff] }
  0x7b   :  { %v956_v58 = vpack.c.bf16 %v328_v57, %v327_v56  ;;  %v330_v60 = vld [vmem:[#allocation8 + $0x38] sm:$0xff]  ;;  %v331_v62 = vld [vmem:[#allocation8 + $0x40] sm:$0xff]  ;;  %v332_v63 = vld [vmem:[#allocation8 + $0x48] sm:$0xff] }
  0x7c   :  { %949 = vmatprep.subr.bf16.mxu0 %v948_v53  ;;  %v960_v61 = vpack.c.bf16 %v330_v60, %v329_v59  ;;  %v964_v0 = vpack.c.bf16 %v332_v63, %v331_v62  ;;  %v333_v1 = vld [vmem:[#allocation8 + $0x50] sm:$0xff]  ;;  %v334_v2 = vld [vmem:[#allocation8 + $0x58] sm:$0xff]  ;;  %v335_v4 = vld [vmem:[#allocation8 + $0x60] sm:$0xff] }
  0x7d   :  { %899 = vmatpush3.bf16.msra.mxu1 %v896_v12  ;;  %951 = vmatpush3.bf16.msra.mxu0 %v948_v53  ;;  %v968_v3 = vpack.c.bf16 %v334_v2, %v333_v1  ;;  %v336_v5 = vld [vmem:[#allocation8 + $0x68] sm:$0xff]  ;;  %v668_v7 = vld [vmem:[%s1435_s2] ss:$0 sm:$0xff]  ;;  %v423_v17 = vld [vmem:[#allocation10] sm:$0xff] }
  0x7e   :  { %901 = vmatprep.subr.bf16.mxu1 %v900_v15  ;;  %953 = vmatprep.subr.bf16.mxu0 %v952_v55  ;;  %v972_v6 = vpack.c.bf16 %v336_v5, %v335_v4  ;;  %v337_v14 = vld [vmem:[#allocation8 + $0x70] sm:$0xff]  ;;  %v427_v23 = vld [vmem:[#allocation10 + $0x20] sm:$0xff]  ;;  %v434_v33 = vld [vmem:[#allocation10 + $0x58] sm:$0xff] }
  0x7f   :  { %v425_v19 = vld [vmem:[#allocation10 + $0x10] sm:$0xff]  ;;  %v431_v29 = vld [vmem:[#allocation10 + $0x40] sm:$0xff]  ;;  %v436_v36 = vld [vmem:[#allocation10 + $0x68] sm:$0xff] }
  0x80   :  { %v429_v26 = vld [vmem:[#allocation10 + $0x30] sm:$0xff]  ;;  %v435_v35 = vld [vmem:[#allocation10 + $0x60] sm:$0xff]  ;;  %v524_v48 = vld [vmem:[#allocation11 + $0x8] sm:$0xff] }
  0x81   :  { %903 = vmatpush3.bf16.msra.mxu1 %v900_v15  ;;  %955 = vmatpush3.bf16.msra.mxu0 %v952_v55  ;;  %v338_v15 = vld [vmem:[#allocation8 + $0x78] sm:$0xff]  ;;  %v433_v32 = vld [vmem:[#allocation10 + $0x50] sm:$0xff]  ;;  %v523_v50 = vld [vmem:[#allocation11] sm:$0xff] }
  0x82   :  { %905 = vmatprep.subr.bf16.mxu1 %v904_v18  ;;  %957 = vmatprep.subr.bf16.mxu0 %v956_v58  ;;  %v976_v16 = vpack.c.bf16 %v338_v15, %v337_v14  ;;  %v669_v38 = vld [vmem:[%s1437_s4] ss:$0 sm:$0xff]  ;;  %v528_v53 = vld [vmem:[#allocation11 + $0x28] sm:$0xff]  ;;  %v530_v54 = vld [vmem:[#allocation11 + $0x38] sm:$0xff] }
  0x83   :  { %v437_v45 = vld [vmem:[#allocation10 + $0x70] sm:$0xff]  ;;  %v1016_v56 = vpack.c.bf16 %v530_v54, %v528_v53  ;;  %v527_v57 = vld [vmem:[#allocation11 + $0x20] sm:$0xff]  ;;  %v532_v59 = vld [vmem:[#allocation11 + $0x48] sm:$0xff] }
  0x84   :  { %v525_v52 = vld [vmem:[#allocation11 + $0x10] sm:$0xff]  ;;  %v534_v60 = vld [vmem:[#allocation11 + $0x58] sm:$0xff]  ;;  %v531_v63 = vld [vmem:[#allocation11 + $0x40] sm:$0xff] }
  0x85   :  { %907 = vmatpush3.bf16.msra.mxu1 %v904_v18  ;;  %959 = vmatpush3.bf16.msra.mxu0 %v956_v58  ;;  %v424_v18 = vld [vmem:[#allocation10 + $0x8] sm:$0xff]  ;;  %v1014_v55 = vpack.c.bf16 %v525_v52, %v523_v50  ;;  %v529_v58 = vld [vmem:[#allocation11 + $0x30] sm:$0xff]  ;;  %v1020_v62 = vpack.c.bf16 %v534_v60, %v532_v59  ;;  %v538_v2 = vld [vmem:[#allocation11 + $0x78] sm:$0xff] }
  0x86   :  { %909 = vmatprep.subr.bf16.mxu1 %v908_v21  ;;  %961 = vmatprep.subr.bf16.mxu0 %v960_v61  ;;  %v980_v20 = vpack.c.bf16 %v424_v18, %v423_v17  ;;  %v536_v1 = vld [vmem:[#allocation11 + $0x68] sm:$0xff]  ;;  %v535_v5 = vld [vmem:[#allocation11 + $0x60] sm:$0xff]  ;;  %v546_v14 = vld [vmem:[#allocation11 + $0xb8] sm:$0xff] }
  0x87   :  { %v1024_v4 = vpack.c.bf16 %v538_v2, %v536_v1  ;;  %v543_v17 = vld [vmem:[#allocation11 + $0xa0] sm:$0xff]  ;;  %v545_v18 = vld [vmem:[#allocation11 + $0xb0] sm:$0xff] }
  0x88   :  { %v555_v50 = vld [vmem:[%s1443_s10] sm:$0x3] }
  0x89   :  { %911 = vmatpush3.bf16.msra.mxu1 %v908_v21  ;;  %963 = vmatpush3.bf16.msra.mxu0 %v960_v61  ;;  %v426_v21 = vld [vmem:[#allocation10 + $0x18] sm:$0xff]  ;;  %v1018_v61 = vpack.c.bf16 %v529_v58, %v527_v57 }
  0x8a   :  { %913 = vmatprep.subr.bf16.mxu1 %v912_v24  ;;  %965 = vmatprep.subr.bf16.mxu0 %v964_v0  ;;  %v984_v22 = vpack.c.bf16 %v426_v21, %v425_v19  ;;  %v548_v19 = vld [vmem:[#allocation11 + $0xc8] sm:$0xff]  ;;  %v1034_v21 = vpack.c.bf16 %v545_v18, %v543_v17 }
  0x8d   :  { %915 = vmatpush3.bf16.msra.mxu1 %v912_v24  ;;  %967 = vmatpush3.bf16.msra.mxu0 %v964_v0  ;;  %v428_v24 = vld [vmem:[#allocation10 + $0x28] sm:$0xff]  ;;  %v533_v0 = vld [vmem:[#allocation11 + $0x50] sm:$0xff] }
  0x8e   :  { %917 = vmatprep.subr.bf16.mxu1 %v916_v27  ;;  %969 = vmatprep.subr.bf16.mxu0 %v968_v3  ;;  %v988_v25 = vpack.c.bf16 %v428_v24, %v427_v23  ;;  %v547_v23 = vld [vmem:[#allocation11 + $0xc0] sm:$0xff]  ;;  %v549_v24 = vld [vmem:[#allocation11 + $0xd0] sm:$0xff] }
  0x90   :  { %777 = vmatmul.mubr.f32.vlgmr.msra.gmra.mrb[0].mxu1 %v122_v30  ;;  %v432_v30 = vld [vmem:[#allocation10 + $0x48] sm:$0xff] }
  0x91   :  { %919 = vmatpush3.bf16.msra.mxu1 %v916_v27  ;;  %971 = vmatpush3.bf16.msra.mxu0 %v968_v3  ;;  %v430_v27 = vld [vmem:[#allocation10 + $0x38] sm:$0xff]  ;;  %v1022_v3 = vpack.c.bf16 %v533_v0, %v531_v63 }
  0x92   :  { %921 = vmatprep.subr.bf16.mxu1 %v920_v31  ;;  %973 = vmatprep.subr.bf16.mxu0 %v972_v6  ;;  %v992_v28 = vpack.c.bf16 %v430_v27, %v429_v26  ;;  %v670_v26 = vld [vmem:[%s1439_s6] ss:$0 sm:$0xff] }
  0x95   :  { %923 = vmatpush3.bf16.msra.mxu1 %v920_v31  ;;  %975 = vmatpush3.bf16.msra.mxu0 %v972_v6  ;;  %v996_v31 = vpack.c.bf16 %v432_v30, %v431_v29  ;;  %v537_v6 = vld [vmem:[#allocation11 + $0x70] sm:$0xff] }
  0x96   :  { %925 = vmatprep.subr.bf16.mxu1 %v924_v34  ;;  %977 = vmatprep.subr.bf16.mxu0 %v976_v16 }
  0x99   :  { %927 = vmatpush3.bf16.msra.mxu1 %v924_v34  ;;  %979 = vmatpush3.bf16.msra.mxu0 %v976_v16  ;;  %v1000_v34 = vpack.c.bf16 %v434_v33, %v433_v32  ;;  %v552_v33 = vld [vmem:[#allocation11 + $0xe8] sm:$0xff] }
  0x9a   :  { %929 = vmatprep.subr.bf16.mxu1 %v928_v37 }
  0x9d   :  { %931 = vmatpush3.bf16.msra.mxu1 %v928_v37  ;;  %v1004_v37 = vpack.c.bf16 %v436_v36, %v435_v35  ;;  %v551_v36 = vld [vmem:[#allocation11 + $0xe0] sm:$0xff] }
  0x9e   :  { %933 = vmatprep.subr.bf16.mxu1 %v932_v40 }
  0xa1   :  { %935 = vmatpush3.bf16.msra.mxu1 %v932_v40 }
  0xa2   :  { %937 = vmatprep.subr.bf16.mxu1 %v936_v43 }
  0xa5   :  { %939 = vmatpush3.bf16.msra.mxu1 %v936_v43 }
  0xa6   :  { %941 = vmatprep.subr.bf16.mxu1 %v940_v46 }
  0xa9   :  { %943 = vmatpush3.bf16.msra.mxu1 %v940_v46  ;;  %v438_v46 = vld [vmem:[#allocation10 + $0x78] sm:$0xff] }
  0xaa   :  { %945 = vmatprep.subr.bf16.mxu1 %v944_v49  ;;  %v1008_v47 = vpack.c.bf16 %v438_v46, %v437_v45 }
  0xad   :  { %947 = vmatpush3.bf16.msra.mxu1 %v944_v49  ;;  %v526_v49 = vld [vmem:[#allocation11 + $0x18] sm:$0xff] }
  0xae   :  { %981 = vmatprep.subr.bf16.mxu1 %v980_v20  ;;  %v1012_v51 = vpack.c.bf16 %v526_v49, %v524_v48 }
  0xb0   :  { %1013 = vmatprep.subr.bf16.mxu0 %v1012_v51 }
 0x163   :  { %v778_v8 = vpop.f32.mrb[0].mxu1 }
 0x164   :  { %v218_v9 = vadd.f32 %v778_v8, %v668_v7  ;;  %v212_v10 = vpop.f32.mrb[1].mxu1  ;;  %v542_v8 = vld [vmem:[#allocation11 + $0x98] sm:$0xff] }
 0x165   :  { %v213_v11 = vadd.f32 %v668_v7, %v212_v10  ;;  %v540_v7 = vld [vmem:[#allocation11 + $0x88] sm:$0xff] }
 0x166   :  { %v222_v13 = vmax.f32 %v218_v9, 0.0  ;;  %v1026_v9 = vpack.c.bf16 %v537_v6, %v535_v5  ;;  %v1028_v10 = vpack.c.bf16 %v542_v8, %v540_v7 }
 0x167   :  { %v221_v12 = vmax.f32 %v213_v11, 0.0  ;;  %v539_v11 = vld [vmem:[#allocation11 + $0x80] sm:$0xff] }
 0x169   :  { %811 = vmatprep.mubr.f32.mxu1 %v221_v12  ;;  %v541_v12 = vld [vmem:[#allocation11 + $0x90] sm:$0xff] }
 0x16a   :  { %812 = vmatmul.mubr.f32.vlgmr.msra.gmra.mrb[2].mxu1 %v222_v13  ;;  %v544_v13 = vld [vmem:[#allocation11 + $0xa8] sm:$0xff]  ;;  %v1030_v15 = vpack.c.bf16 %v541_v12, %v539_v11 }
 0x16b   :  { %983 = vmatpush3.bf16.msra.mxu1 %v980_v20  ;;  %v1032_v16 = vpack.c.bf16 %v546_v14, %v544_v13  ;;  %v550_v20 = vld [vmem:[#allocation11 + $0xd8] sm:$0xff] }
 0x16c   :  { %985 = vmatprep.subr.bf16.mxu1 %v984_v22 }
 0x16f   :  { %987 = vmatpush3.bf16.msra.mxu1 %v984_v22  ;;  %v1036_v22 = vpack.c.bf16 %v550_v20, %v548_v19 }
 0x170   :  { %989 = vmatprep.subr.bf16.mxu1 %v988_v25 }
 0x173   :  { %991 = vmatpush3.bf16.msra.mxu1 %v988_v25  ;;  %v1038_v25 = vpack.c.bf16 %v549_v24, %v547_v23 }
 0x174   :  { %993 = vmatprep.subr.bf16.mxu1 %v992_v28 }
 0x177   :  { %995 = vmatpush3.bf16.msra.mxu1 %v992_v28 }
 0x178   :  { %997 = vmatprep.subr.bf16.mxu1 %v996_v31 }
 0x17b   :  { %999 = vmatpush3.bf16.msra.mxu1 %v996_v31 }
 0x17c   :  { %1001 = vmatprep.subr.bf16.mxu1 %v1000_v34 }
 0x17f   :  { %1003 = vmatpush3.bf16.msra.mxu1 %v1000_v34  ;;  %v554_v34 = vld [vmem:[#allocation11 + $0xf8] sm:$0xff] }
 0x180   :  { %1005 = vmatprep.subr.bf16.mxu1 %v1004_v37  ;;  %v1040_v35 = vpack.c.bf16 %v554_v34, %v552_v33 }
 0x183   :  { %1007 = vmatpush3.bf16.msra.mxu1 %v1004_v37  ;;  %v553_v37 = vld [vmem:[#allocation11 + $0xf0] sm:$0xff] }
 0x184   :  { %1009 = vmatprep.subr.bf16.mxu1 %v1008_v47 }
 0x187   :  { %1011 = vmatpush3.bf16.msra.mxu1 %v1008_v47  ;;  %v557_v47 = vlaneseq }
 0x189   :  { %v558_v48 = vshrl.u32 %v557_v47, 7 }
 0x18b   :  { %v559_v49 = vsub.s32 0, %v558_v48  ;;  %v563_v51 = vsub.s32 1, %v558_v48 }
 0x18d   :  { %v560_v52 = vrot.slane %v555_v50, %v559_v49  ;;  %v564_v53 = vrot.slane %v555_v50, %v563_v51 }
 0x23d   :  { %v813_v39 = vpop.f32.mrb[2].mxu1 }
 0x23e   :  { %v318_v40 = vadd.f32 %v813_v39, %v669_v38  ;;  %v312_v41 = vpop.f32.mrb[3].mxu1  ;;  %v1230_v39 = vmov 0.0  }
 0x23f   :  { %v313_v42 = vadd.f32 %v669_v38, %v312_v41  ;;  %v1042_v38 = vpack.c.bf16 %v553_v37, %v551_v36 }
 0x240   :  { %v322_v44 = vmax.f32 %v318_v40, 0.0  ;;  %v671_v40 = vld [vmem:[%s1441_s8] ss:$0 sm:$0xff]  ;;  %s1231_s8 = smov [#allocation13]  }
 0x241   :  { %v321_v43 = vmax.f32 %v313_v42, 0.0  ;;  %s653_s19 = sshll.u32 %s1231_s8, 4  ;;  %s654_s19 = int_to_ptr.vmem [resolvable:$true] %s653_s19 }
 0x242   :  { %s1188_s21 = scalar_lea.vmem %s654_s19, 512  ;;  %p1193_p7 = scmp.lt.s32.totalorder %s654_s19, %s654_s19 }
 0x243   :  { %846 = vmatprep.mubr.f32.mxu0 %v321_v43  ;;  %p1189_p6 = scmp.ne.s32.totalorder %s654_s19, %s1188_s21  ;;  %p1194_p8 = scmp.lt.s32.totalorder %s1188_s21, %s1188_s21 }
 0x244   :  { %847 = vmatmul.mubr.f32.vlgmr.msra.gmra.mrb[0].mxu0 %v322_v44 }
 0x245   :  { %1015 = vmatpush1.bf16.msra.mxu0 %v1014_v55  ;;  %631 = vmatprep.mubr.f32.mxu0 %v1230_v39  ;;  %p1195_p9 = por %p1194_p8, %p1193_p7 }
 0x246   :  { %1017 = vmatprep.subr.bf16.mxu0 %v1016_v56 }
 0x247   :  { %p1196_p10 = pnand %p1195_p9, %p1189_p6 }
 0x249   :  { %1019 = vmatpush1.bf16.msra.mxu0 %v1018_v61 }
 0x24a   :  { %1021 = vmatprep.subr.bf16.mxu0 %v1020_v62 }
 0x24d   :  { %1023 = vmatpush1.bf16.msra.mxu0 %v1022_v3 }
 0x24e   :  { %1025 = vmatprep.subr.bf16.mxu0 %v1024_v4 }
 0x251   :  { %1027 = vmatpush1.bf16.msra.mxu0 %v1026_v9 }
 0x252   :  { %1029 = vmatprep.subr.bf16.mxu0 %v1028_v10 }
 0x255   :  { %1031 = vmatpush1.bf16.msra.mxu0 %v1030_v15 }
 0x256   :  { %1033 = vmatprep.subr.bf16.mxu0 %v1032_v16 }
 0x259   :  { %1035 = vmatpush1.bf16.msra.mxu0 %v1034_v21 }
 0x25a   :  { %1037 = vmatprep.subr.bf16.mxu0 %v1036_v22 }
 0x25d   :  { %1039 = vmatpush1.bf16.msra.mxu0 %v1038_v25 }
 0x25e   :  { %1041 = vmatprep.subr.bf16.mxu0 %v1040_v35 }
 0x261   :  { %1043 = vmatpush1.bf16.msra.mxu0 %v1042_v38 }
 0x317   :  { %v848_v27 = vpop.f32.mrb[0].mxu0 }
 0x318   :  { %v418_v28 = vadd.f32 %v848_v27, %v670_v26  ;;  %v412_v29 = vpop.f32.mrb[1].mxu0 }
 0x319   :  { %v413_v30 = vadd.f32 %v670_v26, %v412_v29 }
 0x31a   :  { %v422_v32 = vmax.f32 %v418_v28, 0.0 }
 0x31b   :  { %v421_v31 = vmax.f32 %v413_v30, 0.0 }
 0x31d   :  { %881 = vmatprep.mubr.f32.mxu1 %v421_v31 }
 0x31e   :  { %882 = vmatmul.mubr.f32.vlgmr.msra.gmra.mrb[4].mxu1 %v422_v32 }
 0x3f1   :  { %v883_v41 = vpop.f32.mrb[4].mxu1 }
 0x3f2   :  { %v512_v42 = vpop.f32.mrb[5].mxu1  ;;  %v518_v44 = vadd.f32 %v883_v41, %v671_v40 }
 0x3f3   :  { %v513_v43 = vadd.f32 %v671_v40, %v512_v42 }
 0x3f4   :  { %v522_v46 = vmax.f32 %v518_v44, 0.0 }
 0x3f5   :  { %v521_v45 = vmax.f32 %v513_v43, 0.0 }
 0x3f7   :  { %632 = vmatmul.mubr.f32.vlgmr.msra.gmra.mrb[2].mxu0 %v521_v45 }
 0x3f8   :  { %637 = vmatprep.mubr.f32.mxu0 %v1230_v39 }
 0x3fb   :  { %638 = vmatmul.mubr.f32.gmra.mrb[4].mxu0 %v522_v46 }
 0x4ca   :  { %v633_v54 = vpop.f32.mrb[2].mxu0 }
 0x4cb   :  { %v634_v55 = vadd.f32 %v633_v54, %v560_v52  ;;  %v635_v56 = vpop.f32.mrb[3].mxu0 }
 0x4cc   :  { %v636_v57 = vadd.f32 %v635_v56, %v564_v53 }
 0x4cd   :  { %644 = vst [vmem:[#allocation13] sm:$0xff] %v634_v55 }
 0x4ce   :  { %645 = vst [vmem:[#allocation13 + $0x8] sm:$0xff] %v636_v57  ;;  %v639_v58 = vpop.f32.mrb[4].mxu0 }
 0x4cf   :  { %v640_v59 = vadd.f32 %v639_v58, %v560_v52  ;;  %v641_v60 = vpop.f32.mrb[5].mxu0 }
 0x4d0   :  { %v642_v61 = vadd.f32 %v641_v60, %v564_v53 }
 0x4d1   :  { %646 = vst [vmem:[#allocation13 + $0x10] sm:$0xff] %v640_v59 }
 0x4d2   :  { %647 = vst [vmem:[#allocation13 + $0x18] sm:$0xff] %v642_v61 }
 0x4d3   :  { %1199 = shalt.err (!%p1196_p10)
}
 0x4d4   :  { %s1200_s3 = scalar_lea.hbm %s1444_s11, 512 }
 0x4d5   :  { %p1201_p11 = scmp.ne.s32.totalorder %s1444_s11, %s1200_s3  ;;  %p1204_p12 = scmp.lt.u32.totalorder %s1200_s3, %s1444_s11 }
 0x4d7   :  { %p1206_p13 = pnand %p1204_p12, %p1201_p11 }
 0x4d9   :  { %1209 = shalt.err (!%p1206_p13)
}
 0x4da   :  { %659 = dma.vmem_to_hbm [thread:$0]  %s654_s19, 512, %s1444_s11, [#allocation4], %s1228_s7, %s1228_s7, %s1229_s29  }
 0x4db   :  { %1218 = dma.done.wait [#allocation4], 512  }
 0x4dc   :  { %1219 = vsyncadd [#allocation4], 4294966784 }
 0x4dd   :  { %663 = vsyncpa [#allocation3], 1 }
 0x4de   :  { %664 = vsyncpa [#allocation6], 1 }
 0x4df   :  { %665 = vsyncpa [#allocation9], 1 }
 0x4e0   :  { %666 = vsyncpa [#allocation12], 1 }
 0x4e1   :  { %667 = vsyncpa [#allocation4], 1 }

// kernel: tpu_custom_call.1
= control target key start
LH: loop header
LB: loop body
LE: loop exit
PB: predicated region body
PF: predicated region fallthrough
CT: control target
= control target key end

     0   :  { %16 = vsyncpa [#allocation3], 0  ;;  %s1433_s0 = inlined_call_operand.hbm [shape: f32[16,128], index: 0, kind: input, shape index: {}]   ;;  %s1434_s1 = inlined_call_operand.hbm [shape: f32[128,128], index: 1, kind: input, shape index: {}]   ;;  %s1435_s2 = inlined_call_operand.vmem [shape: f32[1,128], index: 2, kind: input, shape index: {}]   ;;  %s1436_s3 = inlined_call_operand.hbm [shape: f32[128,128], index: 3, kind: input, shape index: {}]   ;;  %s1437_s4 = inlined_call_operand.vmem [shape: f32[1,128], index: 4, kind: input, shape index: {}]   ;;  %s1438_s5 = inlined_call_operand.hbm [shape: f32[128,128], index: 5, kind: input, shape index: {}]   ;;  %s1439_s6 = inlined_call_operand.vmem [shape: f32[1,128], index: 6, kind: input, shape index: {}]   ;;  %s1440_s7 = inlined_call_operand.hbm [shape: f32[128,128], index: 7, kind: input, shape index: {}]   ;;  %s1441_s8 = inlined_call_operand.vmem [shape: f32[1,128], index: 8, kind: input, shape index: {}]   ;;  %s1442_s9 = inlined_call_operand.hbm [shape: f32[128,256], index: 9, kind: input, shape index: {}]   ;;  %s1443_s10 = inlined_call_operand.vmem [shape: f32[1,256], index: 10, kind: input, shape index: {}]   ;;  %s1444_s11 = inlined_call_operand.hbm [shape: f32[16,256], index: 11, kind: output, shape index: {}]  }
   0x1   :  { %17 = vsyncpa [#allocation6], 0 }
   0x2   :  { %18 = vsyncpa [#allocation9], 0 }
   0x3   :  { %19 = vsyncpa [#allocation12], 0 }
   0x4   :  { %20 = vsyncpa [#allocation4], 0  ;;  %s1220_s17 = smov [#allocation5]   ;;  %s1221_s19 = smov [#allocation8]  }
   0x5   :  { %s38_s18 = sshll.u32 %s1220_s17, 4  ;;  %s66_s20 = sshll.u32 %s1221_s19, 4  ;;  %s39_s18 = int_to_ptr.vmem [resolvable:$true] %s38_s18  ;;  %s1292_s20 = int_to_ptr.vmem [resolvable:$true] %s66_s20 }
   0x6   :  { %s1056_s23 = scalar_lea.hbm %s1434_s1, 2048 }
   0x7   :  { %p1057_p0 = scmp.ne.s32.totalorder %s1434_s1, %s1056_s23  ;;  %p1060_p1 = scmp.lt.u32.totalorder %s1056_s23, %s1434_s1 }
   0x9   :  { %p1062_p2 = pnand %p1060_p1, %p1057_p0 }
   0xb   :  { %1065 = shalt.err (!%p1062_p2)
}
   0xc   :  { %s1066_s28 = scalar_lea.vmem %s39_s18, 2048  ;;  %p1071_p4 = scmp.lt.s32.totalorder %s39_s18, %s39_s18 }
   0xd   :  { %p1067_p3 = scmp.ne.s32.totalorder %s39_s18, %s1066_s28  ;;  %p1072_p5 = scmp.lt.s32.totalorder %s1066_s28, %s1066_s28 }
   0xf   :  { %p1073_p6 = por %p1072_p5, %p1071_p4 }
  0x11   :  { %p1074_p7 = pnand %p1073_p6, %p1067_p3 }
  0x13   :  { %1077 = shalt.err (!%p1074_p7)
}
  0x14   :  { %s1222_s29 = smov 128   ;;  %s1223_s30 = smov 8  }
  0x15   :  { %44 = dma.hbm_to_vmem [thread:$0]  %s1434_s1, 2048, %s39_s18, [#allocation6], %s1222_s29, %s1222_s29, %s1223_s30  }
  0x16   :  { %s1078_s16 = scalar_lea.hbm %s1438_s5, 2048 }
  0x17   :  { %p1079_p8 = scmp.ne.s32.totalorder %s1438_s5, %s1078_s16  ;;  %p1082_p9 = scmp.lt.u32.totalorder %s1078_s16, %s1438_s5 }
  0x19   :  { %p1084_p10 = pnand %p1082_p9, %p1079_p8 }
  0x1b   :  { %1087 = shalt.err (!%p1084_p10)
}
  0x1c   :  { %s1088_s23 = scalar_lea.vmem %s1292_s20, 2048  ;;  %p1093_p12 = scmp.lt.s32.totalorder %s1292_s20, %s1292_s20 }
  0x1d   :  { %p1089_p11 = scmp.ne.s32.totalorder %s1292_s20, %s1088_s23  ;;  %p1094_p13 = scmp.lt.s32.totalorder %s1088_s23, %s1088_s23 }
  0x1f   :  { %p1095_p0 = por %p1094_p13, %p1093_p12 }
  0x21   :  { %p1096_p1 = pnand %p1095_p0, %p1089_p11 }
  0x23   :  { %1099 = shalt.err (!%p1096_p1)
}
  0x24   :  { %72 = dma.hbm_to_vmem [thread:$0]  %s1438_s5, 2048, %s1292_s20, [#allocation9], %s1222_s29, %s1222_s29, %s1223_s30  }
  0x25   :  { %s1224_s24 = smov [#allocation2]   ;;  %s1225_s26 = smov [#allocation7]  }
  0x26   :  { %s26_s25 = sshll.u32 %s1224_s24, 4  ;;  %s52_s27 = sshll.u32 %s1225_s26, 4  ;;  %s27_s25 = int_to_ptr.vmem [resolvable:$true] %s26_s25  ;;  %s1329_s27 = int_to_ptr.vmem [resolvable:$true] %s52_s27 }
  0x27   :  { %s1100_s13 = scalar_lea.hbm %s1433_s0, 256 }
  0x28   :  { %p1101_p2 = scmp.ne.s32.totalorder %s1433_s0, %s1100_s13  ;;  %p1104_p3 = scmp.lt.u32.totalorder %s1100_s13, %s1433_s0 }
  0x2a   :  { %p1106_p4 = pnand %p1104_p3, %p1101_p2 }
  0x2c   :  { %1109 = shalt.err (!%p1106_p4)
}
  0x2d   :  { %s1110_s5 = scalar_lea.vmem %s27_s25, 256  ;;  %p1115_p6 = scmp.lt.s32.totalorder %s27_s25, %s27_s25 }
  0x2e   :  { %p1111_p5 = scmp.ne.s32.totalorder %s27_s25, %s1110_s5  ;;  %p1116_p7 = scmp.lt.s32.totalorder %s1110_s5, %s1110_s5 }
  0x30   :  { %p1117_p8 = por %p1116_p7, %p1115_p6 }
  0x32   :  { %p1118_p9 = pnand %p1117_p8, %p1111_p5 }
  0x34   :  { %1121 = shalt.err (!%p1118_p9)
}
  0x35   :  { %32 = dma.hbm_to_vmem [thread:$0]  %s1433_s0, 256, %s27_s25, [#allocation3], %s1222_s29, %s1222_s29, %s1223_s30  }
  0x36   :  { %s1122_s23 = scalar_lea.hbm %s1436_s3, 2048 }
  0x37   :  { %p1123_p10 = scmp.ne.s32.totalorder %s1436_s3, %s1122_s23  ;;  %p1126_p11 = scmp.lt.u32.totalorder %s1122_s23, %s1436_s3 }
  0x39   :  { %p1128_p12 = pnand %p1126_p11, %p1123_p10 }
  0x3b   :  { %1131 = shalt.err (!%p1128_p12)
}
  0x3c   :  { %s1132_s28 = scalar_lea.vmem %s1329_s27, 2048  ;;  %p1137_p0 = scmp.lt.s32.totalorder %s1329_s27, %s1329_s27 }
  0x3d   :  { %p1133_p13 = scmp.ne.s32.totalorder %s1329_s27, %s1132_s28  ;;  %p1138_p1 = scmp.lt.s32.totalorder %s1132_s28, %s1132_s28 }
  0x3f   :  { %p1139_p2 = por %p1138_p1, %p1137_p0 }
  0x41   :  { %p1140_p3 = pnand %p1139_p2, %p1133_p13 }
  0x43   :  { %1143 = shalt.err (!%p1140_p3)
}
  0x44   :  { %58 = dma.hbm_to_vmem [thread:$0]  %s1436_s3, 2048, %s1329_s27, [#allocation6], %s1222_s29, %s1222_s29, %s1223_s30  }
  0x45   :  { %s1226_s12 = smov [#allocation10]   ;;  %s1227_s14 = smov [#allocation11]  }
  0x46   :  { %s80_s13 = sshll.u32 %s1226_s12, 4  ;;  %s94_s15 = sshll.u32 %s1227_s14, 4  ;;  %s81_s13 = int_to_ptr.vmem [resolvable:$true] %s80_s13  ;;  %s1366_s15 = int_to_ptr.vmem [resolvable:$true] %s94_s15 }
  0x47   :  { %s1144_s5 = scalar_lea.hbm %s1440_s7, 2048 }
  0x48   :  { %p1145_p4 = scmp.ne.s32.totalorder %s1440_s7, %s1144_s5  ;;  %p1148_p5 = scmp.lt.u32.totalorder %s1144_s5, %s1440_s7 }
  0x4a   :  { %p1150_p6 = pnand %p1148_p5, %p1145_p4 }
  0x4c   :  { %1153 = shalt.err (!%p1150_p6)
}
  0x4d   :  { %s1154_s3 = scalar_lea.vmem %s81_s13, 2048  ;;  %p1159_p8 = scmp.lt.s32.totalorder %s81_s13, %s81_s13 }
  0x4e   :  { %p1155_p7 = scmp.ne.s32.totalorder %s81_s13, %s1154_s3  ;;  %p1160_p9 = scmp.lt.s32.totalorder %s1154_s3, %s1154_s3 }
  0x50   :  { %p1161_p10 = por %p1160_p9, %p1159_p8 }
  0x52   :  { %p1162_p11 = pnand %p1161_p10, %p1155_p7 }
  0x54   :  { %1165 = shalt.err (!%p1162_p11)
}
  0x55   :  { %86 = dma.hbm_to_vmem [thread:$0]  %s1440_s7, 2048, %s81_s13, [#allocation9], %s1222_s29, %s1222_s29, %s1223_s30  }
  0x56   :  { %s1166_s24 = scalar_lea.hbm %s1442_s9, 4096 }
  0x57   :  { %p1167_p12 = scmp.ne.s32.totalorder %s1442_s9, %s1166_s24  ;;  %p1170_p13 = scmp.lt.u32.totalorder %s1166_s24, %s1442_s9 }
  0x59   :  { %p1172_p0 = pnand %p1170_p13, %p1167_p12 }
  0x5b   :  { %1175 = shalt.err (!%p1172_p0)
}
  0x5c   :  { %s1176_s12 = scalar_lea.vmem %s1366_s15, 4096  ;;  %p1181_p2 = scmp.lt.s32.totalorder %s1366_s15, %s1366_s15 }
  0x5d   :  { %p1177_p1 = scmp.ne.s32.totalorder %s1366_s15, %s1176_s12  ;;  %p1182_p3 = scmp.lt.s32.totalorder %s1176_s12, %s1176_s12 }
  0x5f   :  { %p1183_p4 = por %p1182_p3, %p1181_p2 }
  0x61   :  { %p1184_p5 = pnand %p1183_p4, %p1177_p1 }
  0x63   :  { %1187 = shalt.err (!%p1184_p5)
}
  0x64   :  { %s1228_s7 = smov 256   ;;  %s1229_s29 = smov 16  }
  0x65   :  { %100 = dma.hbm_to_vmem [thread:$0]  %s1442_s9, 4096, %s1366_s15, [#allocation12], %s1228_s7, %s1228_s7, %s1229_s29  }
  0x66   :  { %1210 = dma.done.wait [#allocation3], 256  }
  0x67   :  { %1211 = vsyncadd [#allocation3], 4294967040 }
  0x68   :  { %1212 = dma.done.wait [#allocation6], 4096  }
  0x69   :  { %1213 = vsyncadd [#allocation6], 4294963200 }
  0x6a   :  { %1214 = dma.done.wait [#allocation9], 4096  }
  0x6b   :  { %1215 = vsyncadd [#allocation9], 4294963200 }
  0x6c   :  { %1216 = dma.done.wait [#allocation12], 4096  }
  0x6d   :  { %1217 = vsyncadd [#allocation12], 4294963200  ;;  %v123_v0 = vld [vmem:[#allocation5] sm:$0xff]  ;;  %v124_v1 = vld [vmem:[#allocation5 + $0x8] sm:$0xff] }
  0x6e   :  { %v125_v2 = vld [vmem:[#allocation5 + $0x10] sm:$0xff]  ;;  %v884_v3 = vpack.c.bf16 %v124_v1, %v123_v0  ;;  %v126_v4 = vld [vmem:[#allocation5 + $0x18] sm:$0xff]  ;;  %v127_v6 = vld [vmem:[#allocation5 + $0x20] sm:$0xff] }
  0x6f   :  { %v888_v5 = vpack.c.bf16 %v126_v4, %v125_v2  ;;  %v128_v7 = vld [vmem:[#allocation5 + $0x28] sm:$0xff]  ;;  %v121_v9 = vld [vmem:[#allocation2] sm:$0xff]  ;;  %v130_v11 = vld [vmem:[#allocation5 + $0x38] sm:$0xff] }
  0x70   :  { %885 = vmatprep.subr.bf16.mxu1 %v884_v3  ;;  %v892_v8 = vpack.c.bf16 %v128_v7, %v127_v6  ;;  %v129_v10 = vld [vmem:[#allocation5 + $0x30] sm:$0xff]  ;;  %776 = vmatprep.mubr.f32.mxu1 %v121_v9  ;;  %v131_v13 = vld [vmem:[#allocation5 + $0x40] sm:$0xff]  ;;  %v132_v14 = vld [vmem:[#allocation5 + $0x48] sm:$0xff] }
  0x71   :  { %887 = vmatpush3.bf16.msra.mxu1 %v884_v3  ;;  %v896_v12 = vpack.c.bf16 %v130_v11, %v129_v10  ;;  %v900_v15 = vpack.c.bf16 %v132_v14, %v131_v13  ;;  %v133_v16 = vld [vmem:[#allocation5 + $0x50] sm:$0xff]  ;;  %v134_v17 = vld [vmem:[#allocation5 + $0x58] sm:$0xff]  ;;  %v135_v19 = vld [vmem:[#allocation5 + $0x60] sm:$0xff] }
  0x72   :  { %889 = vmatprep.subr.bf16.mxu1 %v888_v5  ;;  %v904_v18 = vpack.c.bf16 %v134_v17, %v133_v16  ;;  %v136_v20 = vld [vmem:[#allocation5 + $0x68] sm:$0xff]  ;;  %v137_v22 = vld [vmem:[#allocation5 + $0x70] sm:$0xff]  ;;  %v138_v23 = vld [vmem:[#allocation5 + $0x78] sm:$0xff] }
  0x73   :  { %v908_v21 = vpack.c.bf16 %v136_v20, %v135_v19  ;;  %v912_v24 = vpack.c.bf16 %v138_v23, %v137_v22  ;;  %v223_v25 = vld [vmem:[#allocation7] sm:$0xff]  ;;  %v224_v26 = vld [vmem:[#allocation7 + $0x8] sm:$0xff]  ;;  %v225_v28 = vld [vmem:[#allocation7 + $0x10] sm:$0xff] }
  0x74   :  { %v916_v27 = vpack.c.bf16 %v224_v26, %v223_v25  ;;  %v226_v29 = vld [vmem:[#allocation7 + $0x18] sm:$0xff]  ;;  %v227_v32 = vld [vmem:[#allocation7 + $0x20] sm:$0xff]  ;;  %v228_v33 = vld [vmem:[#allocation7 + $0x28] sm:$0xff] }
  0x75   :  { %891 = vmatpush3.bf16.msra.mxu1 %v888_v5  ;;  %v122_v30 = vld [vmem:[#allocation2 + $0x8] sm:$0xff]  ;;  %v920_v31 = vpack.c.bf16 %v226_v29, %v225_v28  ;;  %v924_v34 = vpack.c.bf16 %v228_v33, %v227_v32  ;;  %v229_v35 = vld [vmem:[#allocation7 + $0x30] sm:$0xff]  ;;  %v231_v38 = vld [vmem:[#allocation7 + $0x40] sm:$0xff] }
  0x76   :  { %893 = vmatprep.subr.bf16.mxu1 %v892_v8  ;;  %v230_v36 = vld [vmem:[#allocation7 + $0x38] sm:$0xff]  ;;  %v232_v39 = vld [vmem:[#allocation7 + $0x48] sm:$0xff]  ;;  %v233_v41 = vld [vmem:[#allocation7 + $0x50] sm:$0xff] }
  0x77   :  { %v928_v37 = vpack.c.bf16 %v230_v36, %v229_v35  ;;  %v932_v40 = vpack.c.bf16 %v232_v39, %v231_v38  ;;  %v234_v42 = vld [vmem:[#allocation7 + $0x58] sm:$0xff]  ;;  %v235_v44 = vld [vmem:[#allocation7 + $0x60] sm:$0xff]  ;;  %v236_v45 = vld [vmem:[#allocation7 + $0x68] sm:$0xff] }
  0x78   :  { %v936_v43 = vpack.c.bf16 %v234_v42, %v233_v41  ;;  %v940_v46 = vpack.c.bf16 %v236_v45, %v235_v44  ;;  %v237_v47 = vld [vmem:[#allocation7 + $0x70] sm:$0xff]  ;;  %v238_v48 = vld [vmem:[#allocation7 + $0x78] sm:$0xff]  ;;  %v323_v50 = vld [vmem:[#allocation8] sm:$0xff] }
  0x79   :  { %895 = vmatpush3.bf16.msra.mxu1 %v892_v8  ;;  %v944_v49 = vpack.c.bf16 %v238_v48, %v237_v47  ;;  %v324_v51 = vld [vmem:[#allocation8 + $0x8] sm:$0xff]  ;;  %v325_v52 = vld [vmem:[#allocation8 + $0x10] sm:$0xff]  ;;  %v326_v54 = vld [vmem:[#allocation8 + $0x18] sm:$0xff] }
  0x7a   :  { %897 = vmatprep.subr.bf16.mxu1 %v896_v12  ;;  %v948_v53 = vpack.c.bf16 %v324_v51, %v323_v50  ;;  %v952_v55 = vpack.c.bf16 %v326_v54, %v325_v52  ;;  %v327_v56 = vld [vmem:[#allocation8 + $0x20] sm:$0xff]  ;;  %v328_v57 = vld [vmem:[#allocation8 + $0x28] sm:$0xff]  ;;  %v329_v59 = vld [vmem:[#allocation8 + $0x30] sm:$0xff] }
  0x7b   :  { %v956_v58 = vpack.c.bf16 %v328_v57, %v327_v56  ;;  %v330_v60 = vld [vmem:[#allocation8 + $0x38] sm:$0xff]  ;;  %v331_v62 = vld [vmem:[#allocation8 + $0x40] sm:$0xff]  ;;  %v332_v63 = vld [vmem:[#allocation8 + $0x48] sm:$0xff] }
  0x7c   :  { %949 = vmatprep.subr.bf16.mxu0 %v948_v53  ;;  %v960_v61 = vpack.c.bf16 %v330_v60, %v329_v59  ;;  %v964_v0 = vpack.c.bf16 %v332_v63, %v331_v62  ;;  %v333_v1 = vld [vmem:[#allocation8 + $0x50] sm:$0xff]  ;;  %v334_v2 = vld [vmem:[#allocation8 + $0x58] sm:$0xff]  ;;  %v335_v4 = vld [vmem:[#allocation8 + $0x60] sm:$0xff] }
  0x7d   :  { %899 = vmatpush3.bf16.msra.mxu1 %v896_v12  ;;  %951 = vmatpush3.bf16.msra.mxu0 %v948_v53  ;;  %v968_v3 = vpack.c.bf16 %v334_v2, %v333_v1  ;;  %v336_v5 = vld [vmem:[#allocation8 + $0x68] sm:$0xff]  ;;  %v668_v7 = vld [vmem:[%s1435_s2] ss:$0 sm:$0xff]  ;;  %v423_v17 = vld [vmem:[#allocation10] sm:$0xff] }
  0x7e   :  { %901 = vmatprep.subr.bf16.mxu1 %v900_v15  ;;  %953 = vmatprep.subr.bf16.mxu0 %v952_v55  ;;  %v972_v6 = vpack.c.bf16 %v336_v5, %v335_v4  ;;  %v337_v14 = vld [vmem:[#allocation8 + $0x70] sm:$0xff]  ;;  %v427_v23 = vld [vmem:[#allocation10 + $0x20] sm:$0xff]  ;;  %v434_v33 = vld [vmem:[#allocation10 + $0x58] sm:$0xff] }
  0x7f   :  { %v425_v19 = vld [vmem:[#allocation10 + $0x10] sm:$0xff]  ;;  %v431_v29 = vld [vmem:[#allocation10 + $0x40] sm:$0xff]  ;;  %v436_v36 = vld [vmem:[#allocation10 + $0x68] sm:$0xff] }
  0x80   :  { %v429_v26 = vld [vmem:[#allocation10 + $0x30] sm:$0xff]  ;;  %v435_v35 = vld [vmem:[#allocation10 + $0x60] sm:$0xff]  ;;  %v524_v48 = vld [vmem:[#allocation11 + $0x8] sm:$0xff] }
  0x81   :  { %903 = vmatpush3.bf16.msra.mxu1 %v900_v15  ;;  %955 = vmatpush3.bf16.msra.mxu0 %v952_v55  ;;  %v338_v15 = vld [vmem:[#allocation8 + $0x78] sm:$0xff]  ;;  %v433_v32 = vld [vmem:[#allocation10 + $0x50] sm:$0xff]  ;;  %v523_v50 = vld [vmem:[#allocation11] sm:$0xff] }
  0x82   :  { %905 = vmatprep.subr.bf16.mxu1 %v904_v18  ;;  %957 = vmatprep.subr.bf16.mxu0 %v956_v58  ;;  %v976_v16 = vpack.c.bf16 %v338_v15, %v337_v14  ;;  %v669_v38 = vld [vmem:[%s1437_s4] ss:$0 sm:$0xff]  ;;  %v528_v53 = vld [vmem:[#allocation11 + $0x28] sm:$0xff]  ;;  %v530_v54 = vld [vmem:[#allocation11 + $0x38] sm:$0xff] }
  0x83   :  { %v437_v45 = vld [vmem:[#allocation10 + $0x70] sm:$0xff]  ;;  %v1016_v56 = vpack.c.bf16 %v530_v54, %v528_v53  ;;  %v527_v57 = vld [vmem:[#allocation11 + $0x20] sm:$0xff]  ;;  %v532_v59 = vld [vmem:[#allocation11 + $0x48] sm:$0xff] }
  0x84   :  { %v525_v52 = vld [vmem:[#allocation11 + $0x10] sm:$0xff]  ;;  %v534_v60 = vld [vmem:[#allocation11 + $0x58] sm:$0xff]  ;;  %v531_v63 = vld [vmem:[#allocation11 + $0x40] sm:$0xff] }
  0x85   :  { %907 = vmatpush3.bf16.msra.mxu1 %v904_v18  ;;  %959 = vmatpush3.bf16.msra.mxu0 %v956_v58  ;;  %v424_v18 = vld [vmem:[#allocation10 + $0x8] sm:$0xff]  ;;  %v1014_v55 = vpack.c.bf16 %v525_v52, %v523_v50  ;;  %v529_v58 = vld [vmem:[#allocation11 + $0x30] sm:$0xff]  ;;  %v1020_v62 = vpack.c.bf16 %v534_v60, %v532_v59  ;;  %v538_v2 = vld [vmem:[#allocation11 + $0x78] sm:$0xff] }
  0x86   :  { %909 = vmatprep.subr.bf16.mxu1 %v908_v21  ;;  %961 = vmatprep.subr.bf16.mxu0 %v960_v61  ;;  %v980_v20 = vpack.c.bf16 %v424_v18, %v423_v17  ;;  %v536_v1 = vld [vmem:[#allocation11 + $0x68] sm:$0xff]  ;;  %v535_v5 = vld [vmem:[#allocation11 + $0x60] sm:$0xff]  ;;  %v546_v14 = vld [vmem:[#allocation11 + $0xb8] sm:$0xff] }
  0x87   :  { %v1024_v4 = vpack.c.bf16 %v538_v2, %v536_v1  ;;  %v543_v17 = vld [vmem:[#allocation11 + $0xa0] sm:$0xff]  ;;  %v545_v18 = vld [vmem:[#allocation11 + $0xb0] sm:$0xff] }
  0x88   :  { %v555_v50 = vld [vmem:[%s1443_s10] sm:$0x3] }
  0x89   :  { %911 = vmatpush3.bf16.msra.mxu1 %v908_v21  ;;  %963 = vmatpush3.bf16.msra.mxu0 %v960_v61  ;;  %v426_v21 = vld [vmem:[#allocation10 + $0x18] sm:$0xff]  ;;  %v1018_v61 = vpack.c.bf16 %v529_v58, %v527_v57 }
  0x8a   :  { %913 = vmatprep.subr.bf16.mxu1 %v912_v24  ;;  %965 = vmatprep.subr.bf16.mxu0 %v964_v0  ;;  %v984_v22 = vpack.c.bf16 %v426_v21, %v425_v19  ;;  %v548_v19 = vld [vmem:[#allocation11 + $0xc8] sm:$0xff]  ;;  %v1034_v21 = vpack.c.bf16 %v545_v18, %v543_v17 }
  0x8d   :  { %915 = vmatpush3.bf16.msra.mxu1 %v912_v24  ;;  %967 = vmatpush3.bf16.msra.mxu0 %v964_v0  ;;  %v428_v24 = vld [vmem:[#allocation10 + $0x28] sm:$0xff]  ;;  %v533_v0 = vld [vmem:[#allocation11 + $0x50] sm:$0xff] }
  0x8e   :  { %917 = vmatprep.subr.bf16.mxu1 %v916_v27  ;;  %969 = vmatprep.subr.bf16.mxu0 %v968_v3  ;;  %v988_v25 = vpack.c.bf16 %v428_v24, %v427_v23  ;;  %v547_v23 = vld [vmem:[#allocation11 + $0xc0] sm:$0xff]  ;;  %v549_v24 = vld [vmem:[#allocation11 + $0xd0] sm:$0xff] }
  0x90   :  { %777 = vmatmul.mubr.f32.vlgmr.msra.gmra.mrb[0].mxu1 %v122_v30  ;;  %v432_v30 = vld [vmem:[#allocation10 + $0x48] sm:$0xff] }
  0x91   :  { %919 = vmatpush3.bf16.msra.mxu1 %v916_v27  ;;  %971 = vmatpush3.bf16.msra.mxu0 %v968_v3  ;;  %v430_v27 = vld [vmem:[#allocation10 + $0x38] sm:$0xff]  ;;  %v1022_v3 = vpack.c.bf16 %v533_v0, %v531_v63 }
  0x92   :  { %921 = vmatprep.subr.bf16.mxu1 %v920_v31  ;;  %973 = vmatprep.subr.bf16.mxu0 %v972_v6  ;;  %v992_v28 = vpack.c.bf16 %v430_v27, %v429_v26  ;;  %v670_v26 = vld [vmem:[%s1439_s6] ss:$0 sm:$0xff] }
  0x95   :  { %923 = vmatpush3.bf16.msra.mxu1 %v920_v31  ;;  %975 = vmatpush3.bf16.msra.mxu0 %v972_v6  ;;  %v996_v31 = vpack.c.bf16 %v432_v30, %v431_v29  ;;  %v537_v6 = vld [vmem:[#allocation11 + $0x70] sm:$0xff] }
  0x96   :  { %925 = vmatprep.subr.bf16.mxu1 %v924_v34  ;;  %977 = vmatprep.subr.bf16.mxu0 %v976_v16 }
  0x99   :  { %927 = vmatpush3.bf16.msra.mxu1 %v924_v34  ;;  %979 = vmatpush3.bf16.msra.mxu0 %v976_v16  ;;  %v1000_v34 = vpack.c.bf16 %v434_v33, %v433_v32  ;;  %v552_v33 = vld [vmem:[#allocation11 + $0xe8] sm:$0xff] }
  0x9a   :  { %929 = vmatprep.subr.bf16.mxu1 %v928_v37 }
  0x9d   :  { %931 = vmatpush3.bf16.msra.mxu1 %v928_v37  ;;  %v1004_v37 = vpack.c.bf16 %v436_v36, %v435_v35  ;;  %v551_v36 = vld [vmem:[#allocation11 + $0xe0] sm:$0xff] }
  0x9e   :  { %933 = vmatprep.subr.bf16.mxu1 %v932_v40 }
  0xa1   :  { %935 = vmatpush3.bf16.msra.mxu1 %v932_v40 }
  0xa2   :  { %937 = vmatprep.subr.bf16.mxu1 %v936_v43 }
  0xa5   :  { %939 = vmatpush3.bf16.msra.mxu1 %v936_v43 }
  0xa6   :  { %941 = vmatprep.subr.bf16.mxu1 %v940_v46 }
  0xa9   :  { %943 = vmatpush3.bf16.msra.mxu1 %v940_v46  ;;  %v438_v46 = vld [vmem:[#allocation10 + $0x78] sm:$0xff] }
  0xaa   :  { %945 = vmatprep.subr.bf16.mxu1 %v944_v49  ;;  %v1008_v47 = vpack.c.bf16 %v438_v46, %v437_v45 }
  0xad   :  { %947 = vmatpush3.bf16.msra.mxu1 %v944_v49  ;;  %v526_v49 = vld [vmem:[#allocation11 + $0x18] sm:$0xff] }
  0xae   :  { %981 = vmatprep.subr.bf16.mxu1 %v980_v20  ;;  %v1012_v51 = vpack.c.bf16 %v526_v49, %v524_v48 }
  0xb0   :  { %1013 = vmatprep.subr.bf16.mxu0 %v1012_v51 }
 0x163   :  { %v778_v8 = vpop.f32.mrb[0].mxu1 }
 0x164   :  { %v218_v9 = vadd.f32 %v778_v8, %v668_v7  ;;  %v212_v10 = vpop.f32.mrb[1].mxu1  ;;  %v542_v8 = vld [vmem:[#allocation11 + $0x98] sm:$0xff] }
 0x165   :  { %v213_v11 = vadd.f32 %v668_v7, %v212_v10  ;;  %v540_v7 = vld [vmem:[#allocation11 + $0x88] sm:$0xff] }
 0x166   :  { %v222_v13 = vmax.f32 %v218_v9, 0.0  ;;  %v1026_v9 = vpack.c.bf16 %v537_v6, %v535_v5  ;;  %v1028_v10 = vpack.c.bf16 %v542_v8, %v540_v7 }
 0x167   :  { %v221_v12 = vmax.f32 %v213_v11, 0.0  ;;  %v539_v11 = vld [vmem:[#allocation11 + $0x80] sm:$0xff] }
 0x169   :  { %811 = vmatprep.mubr.f32.mxu1 %v221_v12  ;;  %v541_v12 = vld [vmem:[#allocation11 + $0x90] sm:$0xff] }
 0x16a   :  { %812 = vmatmul.mubr.f32.vlgmr.msra.gmra.mrb[2].mxu1 %v222_v13  ;;  %v544_v13 = vld [vmem:[#allocation11 + $0xa8] sm:$0xff]  ;;  %v1030_v15 = vpack.c.bf16 %v541_v12, %v539_v11 }
 0x16b   :  { %983 = vmatpush3.bf16.msra.mxu1 %v980_v20  ;;  %v1032_v16 = vpack.c.bf16 %v546_v14, %v544_v13  ;;  %v550_v20 = vld [vmem:[#allocation11 + $0xd8] sm:$0xff] }
 0x16c   :  { %985 = vmatprep.subr.bf16.mxu1 %v984_v22 }
 0x16f   :  { %987 = vmatpush3.bf16.msra.mxu1 %v984_v22  ;;  %v1036_v22 = vpack.c.bf16 %v550_v20, %v548_v19 }
 0x170   :  { %989 = vmatprep.subr.bf16.mxu1 %v988_v25 }
 0x173   :  { %991 = vmatpush3.bf16.msra.mxu1 %v988_v25  ;;  %v1038_v25 = vpack.c.bf16 %v549_v24, %v547_v23 }
 0x174   :  { %993 = vmatprep.subr.bf16.mxu1 %v992_v28 }
 0x177   :  { %995 = vmatpush3.bf16.msra.mxu1 %v992_v28 }
 0x178   :  { %997 = vmatprep.subr.bf16.mxu1 %v996_v31 }
 0x17b   :  { %999 = vmatpush3.bf16.msra.mxu1 %v996_v31 }
 0x17c   :  { %1001 = vmatprep.subr.bf16.mxu1 %v1000_v34 }
 0x17f   :  { %1003 = vmatpush3.bf16.msra.mxu1 %v1000_v34  ;;  %v554_v34 = vld [vmem:[#allocation11 + $0xf8] sm:$0xff] }
 0x180   :  { %1005 = vmatprep.subr.bf16.mxu1 %v1004_v37  ;;  %v1040_v35 = vpack.c.bf16 %v554_v34, %v552_v33 }
 0x183   :  { %1007 = vmatpush3.bf16.msra.mxu1 %v1004_v37  ;;  %v553_v37 = vld [vmem:[#allocation11 + $0xf0] sm:$0xff] }
 0x184   :  { %1009 = vmatprep.subr.bf16.mxu1 %v1008_v47 }
 0x187   :  { %1011 = vmatpush3.bf16.msra.mxu1 %v1008_v47  ;;  %v557_v47 = vlaneseq }
 0x189   :  { %v558_v48 = vshrl.u32 %v557_v47, 7 }
 0x18b   :  { %v559_v49 = vsub.s32 0, %v558_v48  ;;  %v563_v51 = vsub.s32 1, %v558_v48 }
 0x18d   :  { %v560_v52 = vrot.slane %v555_v50, %v559_v49  ;;  %v564_v53 = vrot.slane %v555_v50, %v563_v51 }
 0x23d   :  { %v813_v39 = vpop.f32.mrb[2].mxu1 }
 0x23e   :  { %v318_v40 = vadd.f32 %v813_v39, %v669_v38  ;;  %v312_v41 = vpop.f32.mrb[3].mxu1  ;;  %v1230_v39 = vmov 0.0  }
 0x23f   :  { %v313_v42 = vadd.f32 %v669_v38, %v312_v41  ;;  %v1042_v38 = vpack.c.bf16 %v553_v37, %v551_v36 }
 0x240   :  { %v322_v44 = vmax.f32 %v318_v40, 0.0  ;;  %v671_v40 = vld [vmem:[%s1441_s8] ss:$0 sm:$0xff]  ;;  %s1231_s8 = smov [#allocation13]  }
 0x241   :  { %v321_v43 = vmax.f32 %v313_v42, 0.0  ;;  %s653_s19 = sshll.u32 %s1231_s8, 4  ;;  %s654_s19 = int_to_ptr.vmem [resolvable:$true] %s653_s19 }
 0x242   :  { %s1188_s21 = scalar_lea.vmem %s654_s19, 512  ;;  %p1193_p7 = scmp.lt.s32.totalorder %s654_s19, %s654_s19 }
 0x243   :  { %846 = vmatprep.mubr.f32.mxu0 %v321_v43  ;;  %p1189_p6 = scmp.ne.s32.totalorder %s654_s19, %s1188_s21  ;;  %p1194_p8 = scmp.lt.s32.totalorder %s1188_s21, %s1188_s21 }
 0x244   :  { %847 = vmatmul.mubr.f32.vlgmr.msra.gmra.mrb[0].mxu0 %v322_v44 }
 0x245   :  { %1015 = vmatpush1.bf16.msra.mxu0 %v1014_v55  ;;  %631 = vmatprep.mubr.f32.mxu0 %v1230_v39  ;;  %p1195_p9 = por %p1194_p8, %p1193_p7 }
 0x246   :  { %1017 = vmatprep.subr.bf16.mxu0 %v1016_v56 }
 0x247   :  { %p1196_p10 = pnand %p1195_p9, %p1189_p6 }
 0x249   :  { %1019 = vmatpush1.bf16.msra.mxu0 %v1018_v61 }
 0x24a   :  { %1021 = vmatprep.subr.bf16.mxu0 %v1020_v62 }
 0x24d   :  { %1023 = vmatpush1.bf16.msra.mxu0 %v1022_v3 }
 0x24e   :  { %1025 = vmatprep.subr.bf16.mxu0 %v1024_v4 }
 0x251   :  { %1027 = vmatpush1.bf16.msra.mxu0 %v1026_v9 }
 0x252   :  { %1029 = vmatprep.subr.bf16.mxu0 %v1028_v10 }
 0x255   :  { %1031 = vmatpush1.bf16.msra.mxu0 %v1030_v15 }
 0x256   :  { %1033 = vmatprep.subr.bf16.mxu0 %v1032_v16 }
 0x259   :  { %1035 = vmatpush1.bf16.msra.mxu0 %v1034_v21 }
 0x25a   :  { %1037 = vmatprep.subr.bf16.mxu0 %v1036_v22 }
 0x25d   :  { %1039 = vmatpush1.bf16.msra.mxu0 %v1038_v25 }
 0x25e   :  { %1041 = vmatprep.subr.bf16.mxu0 %v1040_v35 }
 0x261   :  { %1043 = vmatpush1.bf16.msra.mxu0 %v1042_v38 }
 0x317   :  { %v848_v27 = vpop.f32.mrb[0].mxu0 }
 0x318   :  { %v418_v28 = vadd.f32 %v848_v27, %v670_v26  ;;  %v412_v29 = vpop.f32.mrb[1].mxu0 }
 0x319   :  { %v413_v30 = vadd.f32 %v670_v26, %v412_v29 }
 0x31a   :  { %v422_v32 = vmax.f32 %v418_v28, 0.0 }
 0x31b   :  { %v421_v31 = vmax.f32 %v413_v30, 0.0 }
 0x31d   :  { %881 = vmatprep.mubr.f32.mxu1 %v421_v31 }
 0x31e   :  { %882 = vmatmul.mubr.f32.vlgmr.msra.gmra.mrb[4].mxu1 %v422_v32 }
 0x3f1   :  { %v883_v41 = vpop.f32.mrb[4].mxu1 }
 0x3f2   :  { %v512_v42 = vpop.f32.mrb[5].mxu1  ;;  %v518_v44 = vadd.f32 %v883_v41, %v671_v40 }
 0x3f3   :  { %v513_v43 = vadd.f32 %v671_v40, %v512_v42 }
 0x3f4   :  { %v522_v46 = vmax.f32 %v518_v44, 0.0 }
 0x3f5   :  { %v521_v45 = vmax.f32 %v513_v43, 0.0 }
 0x3f7   :  { %632 = vmatmul.mubr.f32.vlgmr.msra.gmra.mrb[2].mxu0 %v521_v45 }
 0x3f8   :  { %637 = vmatprep.mubr.f32.mxu0 %v1230_v39 }
 0x3fb   :  { %638 = vmatmul.mubr.f32.gmra.mrb[4].mxu0 %v522_v46 }
 0x4ca   :  { %v633_v54 = vpop.f32.mrb[2].mxu0 }
 0x4cb   :  { %v634_v55 = vadd.f32 %v633_v54, %v560_v52  ;;  %v635_v56 = vpop.f32.mrb[3].mxu0 }
 0x4cc   :  { %v636_v57 = vadd.f32 %v635_v56, %v564_v53 }
 0x4cd   :  { %644 = vst [vmem:[#allocation13] sm:$0xff] %v634_v55 }
 0x4ce   :  { %645 = vst [vmem:[#allocation13 + $0x8] sm:$0xff] %v636_v57  ;;  %v639_v58 = vpop.f32.mrb[4].mxu0 }
 0x4cf   :  { %v640_v59 = vadd.f32 %v639_v58, %v560_v52  ;;  %v641_v60 = vpop.f32.mrb[5].mxu0 }
 0x4d0   :  { %v642_v61 = vadd.f32 %v641_v60, %v564_v53 }
 0x4d1   :  { %646 = vst [vmem:[#allocation13 + $0x10] sm:$0xff] %v640_v59 }
 0x4d2   :  { %647 = vst [vmem:[#allocation13 + $0x18] sm:$0xff] %v642_v61 }
 0x4d3   :  { %1199 = shalt.err (!%p1196_p10)
}
 0x4d4   :  { %s1200_s3 = scalar_lea.hbm %s1444_s11, 512 }
 0x4d5   :  { %p1201_p11 = scmp.ne.s32.totalorder %s1444_s11, %s1200_s3  ;;  %p1204_p12 = scmp.lt.u32.totalorder %s1200_s3, %s1444_s11 }
 0x4d7   :  { %p1206_p13 = pnand %p1204_p12, %p1201_p11 }
 0x4d9   :  { %1209 = shalt.err (!%p1206_p13)
}
 0x4da   :  { %659 = dma.vmem_to_hbm [thread:$0]  %s654_s19, 512, %s1444_s11, [#allocation4], %s1228_s7, %s1228_s7, %s1229_s29  }
 0x4db   :  { %1218 = dma.done.wait [#allocation4], 512  }
 0x4dc   :  { %1219 = vsyncadd [#allocation4], 4294966784 }
 0x4dd   :  { %663 = vsyncpa [#allocation3], 1 }
 0x4de   :  { %664 = vsyncpa [#allocation6], 1 }
 0x4df   :  { %665 = vsyncpa [#allocation9], 1 }
 0x4e0   :  { %666 = vsyncpa [#allocation12], 1 }
 0x4e1   :  { %667 = vsyncpa [#allocation4], 1 }

</bundles_post_ra>
